<compile_context>
chip_gen: v7x
topology: tpu7x:2x2x1
jax: 0.10.0
libtpu: 0.0.40
codegen_flags: <defaults>
</compile_context>

<pallas_src>
import functools

import jax
import jax.numpy as jnp
from jax import lax
from jax.experimental import pallas as pl
from jax.experimental.pallas import tpu as pltpu


# ----------------------------- model hyperparams ----------------------------
VOCAB_SIZE = 65
N_EMBD = 32
N_HEAD = 4
N_LAYER = 2
BLOCK_SIZE = 8       # max sequence length
LN_EPS = 1e-5

VOCAB_PAD = 128      # lane-dense padding for the one-hot gather and lm_head
NEG_INF = -1e30


# ------------------------------- kernel helpers -----------------------------
def _layernorm(x, gamma, beta):
    # LayerNorm over last dim, biased variance, eps=1e-5 (PyTorch semantics).
    mean = jnp.mean(x, axis=-1, keepdims=True)
    var = jnp.mean((x - mean) ** 2, axis=-1, keepdims=True)
    return (x - mean) * lax.rsqrt(var + LN_EPS) * gamma + beta


def _batch_pos_ids(bt, seq_len):
    """(batch_id, pos_id) for rows/cols of the flattened (BT, BT) score tile."""
    r = lax.broadcasted_iota(jnp.int32, (bt, bt), 0)
    c = lax.broadcasted_iota(jnp.int32, (bt, bt), 1)
    if seq_len & (seq_len - 1) == 0:           # power of 2: cheap VPU bit ops
        sh = seq_len.bit_length() - 1
        return (r >> sh, r & (seq_len - 1)), (c >> sh, c & (seq_len - 1))
    return (r // seq_len, r % seq_len), (c // seq_len, c % seq_len)


# --------------------------------- fused kernel ------------------------------
def _gpt_kernel(idx_ref, tok_ref, pos_ref,
                wqkv_ref, wproj_ref, bproj_ref,
                ln1g_ref, ln1b_ref,
                w1_ref, b1_ref, w2_ref, b2_ref,
                ln2g_ref, ln2b_ref,
                lnfg_ref, lnfb_ref,
                wlm_ref, blm_ref,
                o_ref, *, n_head):
    f32 = jnp.float32
    bt = idx_ref.shape[0]                      # B*T flattened tokens
    vocab_pad, c = tok_ref.shape
    t = pos_ref.shape[0]
    n_layer = wqkv_ref.shape[0]
    hs = c // n_head

    # --- fused token + position embedding gather (lane-dense one-hot matmuls)
    idx = idx_ref[...]                                              # (BT, 1)
    tok_onehot = (idx == lax.broadcasted_iota(jnp.int32, (bt, vocab_pad), 1)
                  ).astype(f32)                                     # (BT, 128)
    x = jnp.dot(tok_onehot, tok_ref[...], preferred_element_type=f32)

    if t & (t - 1) == 0:
        pos_id = lax.broadcasted_iota(jnp.int32, (bt, t), 0) & (t - 1)
    else:
        pos_id = lax.broadcasted_iota(jnp.int32, (bt, t), 0) % t
    pos_onehot = (pos_id == lax.broadcasted_iota(jnp.int32, (bt, t), 1)
                  ).astype(f32)                                     # (BT, T)
    x = x + jnp.dot(pos_onehot, pos_ref[...], preferred_element_type=f32)

    # --- block-diagonal causal mask over the flattened token axis ------------
    (rb, rt), (cb, ct) = _batch_pos_ids(bt, t)
    attn_mask = (rb == cb) & (ct <= rt)                             # (BT, BT)

    scale = 1.0 / (hs ** 0.5)

    # --- N_LAYER transformer blocks, statically unrolled, VMEM-resident ------
    for layer in range(n_layer):
        qkv = jnp.dot(x, wqkv_ref[layer], preferred_element_type=f32)  # (BT,3C)
        wproj = wproj_ref[layer]                                       # (C, C)
        sa = jnp.broadcast_to(bproj_ref[layer], (bt, c))               # proj bias

        for h in range(n_head):                 # static head loop, lane slices
            lo = h * hs
            qh = qkv[:, lo:lo + hs]
            kh = qkv[:, c + lo:c + lo + hs]
            vh = qkv[:, 2 * c + lo:2 * c + lo + hs]
            s = lax.dot_general(qh, kh, (((1,), (1,)), ((), ())),
                                preferred_element_type=f32) * scale    # (BT,BT)
            s = jnp.where(attn_mask, s, NEG_INF)
            m = jnp.max(s, axis=-1, keepdims=True)
            e = jnp.exp(s - m)
            wei = e * pl.reciprocal(jnp.sum(e, axis=-1, keepdims=True),
                                    approx=True)
            ah = jnp.dot(wei, vh, preferred_element_type=f32)          # (BT,hs)
            # fold the per-head output projection in directly (no concat)
            sa = sa + jnp.dot(ah, wproj[lo:lo + hs, :],
                              preferred_element_type=f32)

        # TODO(synk): dropout is identity (eval / p = 0).
        x = _layernorm(x + sa, ln1g_ref[layer], ln1b_ref[layer])

        hact = jnp.dot(x, w1_ref[layer], preferred_element_type=f32) \
            + b1_ref[layer]
        hact = jnp.maximum(hact, 0.0)
        ff = jnp.dot(hact, w2_ref[layer], preferred_element_type=f32) \
            + b2_ref[layer]
        x = _layernorm(x + ff, ln2g_ref[layer], ln2b_ref[layer])

    # --- final LayerNorm + lm_head (vocab padded to 128 lanes) ----------------
    xn = _layernorm(x, lnfg_ref[...], lnfb_ref[...])
    logits = jnp.dot(xn, wlm_ref[...], preferred_element_type=f32) + blm_ref[...]
    o_ref[...] = logits.astype(o_ref.dtype)


# ------------------------------- pallas wrapper ------------------------------
def gpt_forward(index, params):
    """index: int32 [B, T] token ids.  Returns logits [B, T, VOCAB_SIZE]."""
    B, T = index.shape
    p = params
    idx_flat = index.reshape(B * T, 1).astype(jnp.int32)
    args = (idx_flat, p['tok_emb_pad'], p['pos_emb'][:T],
            p['w_qkv'], p['w_proj'], p['b_proj'],
            p['ln1_g'], p['ln1_b'],
            p['ffn_w1'], p['ffn_b1'], p['ffn_w2'], p['ffn_b2'],
            p['ln2_g'], p['ln2_b'],
            p['lnf_g'], p['lnf_b'],
            p['w_lm_pad'], p['b_lm_pad'])

    kernel = functools.partial(_gpt_kernel, n_head=N_HEAD)
    logits_pad = pl.pallas_call(
        kernel,
        out_shape=jax.ShapeDtypeStruct((B * T, VOCAB_PAD), jnp.float32),
        in_specs=[pl.BlockSpec(memory_space=pltpu.MemorySpace.VMEM)] * len(args),
        out_specs=pl.BlockSpec(memory_space=pltpu.MemorySpace.VMEM),
    )(*args)
    # strip lane padding (padded lm_head columns are zero)
    return logits_pad.reshape(B, T, VOCAB_PAD)[:, :, :VOCAB_SIZE]


# ------------------------------- parameter init -----------------------------
def init_params(key):
    keys = iter(jax.random.split(key, 8 + 8 * N_LAYER))
    f32 = jnp.float32

    def linear_w(k, fan_in, fan_out):
        # module._init_weights: normal(0, 0.02), zero bias
        return 0.02 * jax.random.normal(k, (fan_in, fan_out), f32)

    # embeddings (nn.Embedding default init: N(0, 1)); token table lane-padded
    tok = jax.random.normal(next(keys), (VOCAB_SIZE, N_EMBD), f32)
    tok_pad = jnp.zeros((VOCAB_PAD, N_EMBD), f32).at[:VOCAB_SIZE].set(tok)
    pos = jax.random.normal(next(keys), (BLOCK_SIZE, N_EMBD), f32)

    wqkv, wproj, bproj = [], [], []
    ln1g, ln1b, ln2g, ln2b = [], [], [], []
    w1, b1, w2, b2 = [], [], [], []
    for _ in range(N_LAYER):
        wqkv.append(linear_w(next(keys), N_EMBD, 3 * N_EMBD))
        wproj.append(linear_w(next(keys), N_EMBD, N_EMBD))
        bproj.append(jnp.zeros((1, N_EMBD), f32))
        ln1g.append(jnp.ones((1, N_EMBD), f32))
        ln1b.append(jnp.zeros((1, N_EMBD), f32))
        w1.append(linear_w(next(keys), N_EMBD, 4 * N_EMBD))
        b1.append(jnp.zeros((1, 4 * N_EMBD), f32))
        w2.append(linear_w(next(keys), 4 * N_EMBD, N_EMBD))
        b2.append(jnp.zeros((1, N_EMBD), f32))
        ln2g.append(jnp.ones((1, N_EMBD), f32))
        ln2b.append(jnp.zeros((1, N_EMBD), f32))

    stack = lambda xs: jnp.stack(xs, axis=0)

    w_lm = linear_w(next(keys), N_EMBD, VOCAB_SIZE)
    w_lm_pad = jnp.zeros((N_EMBD, VOCAB_PAD), f32).at[:, :VOCAB_SIZE].set(w_lm)
    b_lm_pad = jnp.zeros((1, VOCAB_PAD), f32)

    return {
        'tok_emb_pad': tok_pad, 'pos_emb': pos,
        'w_qkv': stack(wqkv), 'w_proj': stack(wproj), 'b_proj': stack(bproj),
        'ln1_g': stack(ln1g), 'ln1_b': stack(ln1b),
        'ffn_w1': stack(w1), 'ffn_b1': stack(b1),
        'ffn_w2': stack(w2), 'ffn_b2': stack(b2),
        'ln2_g': stack(ln2g), 'ln2_b': stack(ln2b),
        'lnf_g': jnp.ones((1, N_EMBD), f32), 'lnf_b': jnp.zeros((1, N_EMBD), f32),
        'w_lm_pad': w_lm_pad, 'b_lm_pad': b_lm_pad,
    }


# --------------------------- pure-JAX reference ------------------------------
def _ref_forward(index, params):
    def ln(x, g, b):
        mu = x.mean(-1, keepdims=True)
        var = ((x - mu) ** 2).mean(-1, keepdims=True)
        return (x - mu) / jnp.sqrt(var + LN_EPS) * g + b

    B, T = index.shape
    C, H = N_EMBD, N_HEAD
    hs = C // H
    x = jnp.take(params['tok_emb_pad'], index, axis=0) + params['pos_emb'][:T]
    for l in range(N_LAYER):
        qkv = x @ params['w_qkv'][l]
        q = qkv[..., :C].reshape(B, T, H, hs)
        k = qkv[..., C:2 * C].reshape(B, T, H, hs)
        v = qkv[..., 2 * C:].reshape(B, T, H, hs)
        s = jnp.einsum('bthd,bshd->bhts', q, k) * hs ** -0.5
        mask = jnp.tril(jnp.ones((T, T), bool))
        s = jnp.where(mask, s, -jnp.inf)
        w = jax.nn.softmax(s, axis=-1)
        a = jnp.einsum('bhts,bshd->bthd', w, v).reshape(B, T, C)
        sa = a @ params['w_proj'][l] + params['b_proj'][l]
        x = ln(x + sa, params['ln1_g'][l], params['ln1_b'][l])
        h = jnp.maximum(x @ params['ffn_w1'][l] + params['ffn_b1'][l], 0.0)
        ff = h @ params['ffn_w2'][l] + params['ffn_b2'][l]
        x = ln(x + ff, params['ln2_g'][l], params['ln2_b'][l])
    xn = ln(x, params['lnf_g'], params['lnf_b'])
    logits = xn @ params['w_lm_pad'] + params['b_lm_pad']
    return logits[:, :, :VOCAB_SIZE]


# ------------------------------------ main -----------------------------------
if __name__ == "__main__":
    key = jax.random.PRNGKey(0)
    pkey, ikey = jax.random.split(key)
    params = init_params(pkey)

    B, T = 2, BLOCK_SIZE
    index = jax.random.randint(ikey, (B, T), 0, VOCAB_SIZE, dtype=jnp.int32)

    logits = jax.block_until_ready(gpt_forward(index, params))
    ref = _ref_forward(index, params)

    assert logits.shape == (B, T, VOCAB_SIZE)
    assert jnp.allclose(logits, ref, atol=1e-3, rtol=1e-3), "mismatch vs ref"

    print("KERNEL_OK")
</pallas_src>

<mosaic_0001>
module attributes {stable_mosaic.version = 11 : i64} {
  func.func @_gpt_kernel(%arg0: memref<16x1xi32, #tpu.memory_space<vmem>>, %arg1: memref<128x32xf32, #tpu.memory_space<vmem>>, %arg2: memref<8x32xf32, #tpu.memory_space<vmem>>, %arg3: memref<2x32x96xf32, #tpu.memory_space<vmem>>, %arg4: memref<2x32x32xf32, #tpu.memory_space<vmem>>, %arg5: memref<2x1x32xf32, #tpu.memory_space<vmem>>, %arg6: memref<2x1x32xf32, #tpu.memory_space<vmem>>, %arg7: memref<2x1x32xf32, #tpu.memory_space<vmem>>, %arg8: memref<2x32x128xf32, #tpu.memory_space<vmem>>, %arg9: memref<2x1x128xf32, #tpu.memory_space<vmem>>, %arg10: memref<2x128x32xf32, #tpu.memory_space<vmem>>, %arg11: memref<2x1x32xf32, #tpu.memory_space<vmem>>, %arg12: memref<2x1x32xf32, #tpu.memory_space<vmem>>, %arg13: memref<2x1x32xf32, #tpu.memory_space<vmem>>, %arg14: memref<1x32xf32, #tpu.memory_space<vmem>>, %arg15: memref<1x32xf32, #tpu.memory_space<vmem>>, %arg16: memref<32x128xf32, #tpu.memory_space<vmem>>, %arg17: memref<1x128xf32, #tpu.memory_space<vmem>>, %arg18: memref<16x128xf32, #tpu.memory_space<vmem>>) attributes {dimension_semantics = [], scalar_prefetch = 0 : i64, scratch_operands = 0 : i64, tpu.core_type = #tpu.core_type<tc>} {
    %c0 = arith.constant 0 : index
    %c0_0 = arith.constant 0 : index
    %0 = vector.load %arg0[%c0, %c0_0] : memref<16x1xi32, #tpu.memory_space<vmem>>, vector<16x1xi32>
    %1 = tpu.iota {dimensions = array<i32: 1>} : vector<16x128xi32>
    %2 = vector.broadcast %0 : vector<16x1xi32> to vector<16x128xi32>
    %3 = arith.cmpi eq, %2, %1 : vector<16x128xi32>
    %4 = arith.extui %3 : vector<16x128xi1> to vector<16x128xi32>
    %5 = arith.sitofp %4 : vector<16x128xi32> to vector<16x128xf32>
    %c0_1 = arith.constant 0 : index
    %c0_2 = arith.constant 0 : index
    %6 = vector.load %arg1[%c0_1, %c0_2] : memref<128x32xf32, #tpu.memory_space<vmem>>, vector<128x32xf32>
    %cst = arith.constant dense<0.000000e+00> : vector<16x32xf32>
    %7 = tpu.matmul %5, %6, %cst {dimension_numbers = #tpu.dot_dimension_numbers<[1], [0], [0], [1], [0, 0, 1, 1], [], []>} : vector<16x128xf32>, vector<128x32xf32>, vector<16x32xf32> -> vector<16x32xf32>
    %8 = tpu.iota {dimensions = array<i32: 0>} : vector<16x8xi32>
    %c7_i32 = arith.constant 7 : i32
    %9 = vector.broadcast %c7_i32 : i32 to vector<16x8xi32>
    %10 = arith.andi %8, %9 : vector<16x8xi32>
    %11 = tpu.iota {dimensions = array<i32: 1>} : vector<16x8xi32>
    %12 = arith.cmpi eq, %10, %11 : vector<16x8xi32>
    %13 = arith.extui %12 : vector<16x8xi1> to vector<16x8xi32>
    %14 = arith.sitofp %13 : vector<16x8xi32> to vector<16x8xf32>
    %c0_3 = arith.constant 0 : index
    %c0_4 = arith.constant 0 : index
    %15 = vector.load %arg2[%c0_3, %c0_4] : memref<8x32xf32, #tpu.memory_space<vmem>>, vector<8x32xf32>
    %cst_5 = arith.constant dense<0.000000e+00> : vector<16x32xf32>
    %16 = tpu.matmul %14, %15, %cst_5 {dimension_numbers = #tpu.dot_dimension_numbers<[1], [0], [0], [1], [0, 0, 1, 1], [], []>} : vector<16x8xf32>, vector<8x32xf32>, vector<16x32xf32> -> vector<16x32xf32>
    %17 = arith.addf %7, %16 : vector<16x32xf32>
    %18 = tpu.iota {dimensions = array<i32: 0>} : vector<16x16xi32>
    %19 = tpu.iota {dimensions = array<i32: 1>} : vector<16x16xi32>
    %c3_i32 = arith.constant 3 : i32
    %20 = vector.broadcast %c3_i32 : i32 to vector<16x16xi32>
    %21 = arith.shrsi %18, %20 : vector<16x16xi32>
    %c7_i32_6 = arith.constant 7 : i32
    %22 = vector.broadcast %c7_i32_6 : i32 to vector<16x16xi32>
    %23 = arith.andi %18, %22 : vector<16x16xi32>
    %c3_i32_7 = arith.constant 3 : i32
    %24 = vector.broadcast %c3_i32_7 : i32 to vector<16x16xi32>
    %25 = arith.shrsi %19, %24 : vector<16x16xi32>
    %c7_i32_8 = arith.constant 7 : i32
    %26 = vector.broadcast %c7_i32_8 : i32 to vector<16x16xi32>
    %27 = arith.andi %19, %26 : vector<16x16xi32>
    %28 = arith.cmpi eq, %21, %25 : vector<16x16xi32>
    %29 = arith.cmpi sle, %27, %23 : vector<16x16xi32>
    %30 = arith.andi %28, %29 : vector<16x16xi1>
    %c0_9 = arith.constant 0 : index
    %c0_10 = arith.constant 0 : index
    %c0_11 = arith.constant 0 : index
    %31 = vector.load %arg3[%c0_9, %c0_10, %c0_11] : memref<2x32x96xf32, #tpu.memory_space<vmem>>, vector<1x32x96xf32>
    %32 = vector.shape_cast %31 : vector<1x32x96xf32> to vector<32x96xf32>
    %cst_12 = arith.constant dense<0.000000e+00> : vector<16x96xf32>
    %33 = tpu.matmul %17, %32, %cst_12 {dimension_numbers = #tpu.dot_dimension_numbers<[1], [0], [0], [1], [0, 0, 1, 1], [], []>} : vector<16x32xf32>, vector<32x96xf32>, vector<16x96xf32> -> vector<16x96xf32>
    %c0_13 = arith.constant 0 : index
    %c0_14 = arith.constant 0 : index
    %c0_15 = arith.constant 0 : index
    %34 = vector.load %arg4[%c0_13, %c0_14, %c0_15] : memref<2x32x32xf32, #tpu.memory_space<vmem>>, vector<1x32x32xf32>
    %35 = vector.shape_cast %34 : vector<1x32x32xf32> to vector<32x32xf32>
    %c0_16 = arith.constant 0 : index
    %c0_17 = arith.constant 0 : index
    %c0_18 = arith.constant 0 : index
    %36 = vector.load %arg5[%c0_16, %c0_17, %c0_18] : memref<2x1x32xf32, #tpu.memory_space<vmem>>, vector<1x1x32xf32>
    %37 = vector.shape_cast %36 : vector<1x1x32xf32> to vector<1x32xf32>
    %38 = vector.shape_cast %37 : vector<1x32xf32> to vector<1x32xf32>
    %39 = vector.broadcast %38 : vector<1x32xf32> to vector<16x32xf32>
    %40 = vector.extract_strided_slice %33 {offsets = [0, 0], sizes = [16, 8], strides = [1, 1]} : vector<16x96xf32> to vector<16x8xf32>
    %41 = vector.extract_strided_slice %33 {offsets = [0, 32], sizes = [16, 8], strides = [1, 1]} : vector<16x96xf32> to vector<16x8xf32>
    %42 = vector.extract_strided_slice %33 {offsets = [0, 64], sizes = [16, 8], strides = [1, 1]} : vector<16x96xf32> to vector<16x8xf32>
    %cst_19 = arith.constant dense<0.000000e+00> : vector<16x16xf32>
    %43 = tpu.matmul %40, %41, %cst_19 {dimension_numbers = #tpu.dot_dimension_numbers<[1], [1], [0], [0], [0, 0, 1, 0], [], []>} : vector<16x8xf32>, vector<16x8xf32>, vector<16x16xf32> -> vector<16x16xf32>
    %cst_20 = arith.constant 0.353553385 : f32
    %44 = vector.broadcast %cst_20 : f32 to vector<16x16xf32>
    %45 = arith.mulf %43, %44 : vector<16x16xf32>
    %cst_21 = arith.constant -1.000000e+30 : f32
    %46 = vector.broadcast %cst_21 : f32 to vector<16x16xf32>
    %47 = arith.select %30, %45, %46 : vector<16x16xi1>, vector<16x16xf32>
    %cst_22 = arith.constant dense<0xFF800000> : vector<16xf32>
    %48 = vector.multi_reduction <maximumf>, %47, %cst_22 [1] : vector<16x16xf32> to vector<16xf32>
    %49 = vector.shape_cast %48 : vector<16xf32> to vector<16x1xf32>
    %50 = vector.broadcast %49 : vector<16x1xf32> to vector<16x16xf32>
    %51 = arith.subf %47, %50 : vector<16x16xf32>
    %52 = math.exp %51 : vector<16x16xf32>
    %cst_23 = arith.constant dense<0.000000e+00> : vector<16xf32>
    %53 = vector.multi_reduction <add>, %52, %cst_23 [1] : vector<16x16xf32> to vector<16xf32>
    %54 = vector.shape_cast %53 : vector<16xf32> to vector<16x1xf32>
    %55 = tpu.reciprocal %54 {approx = true} : vector<16x1xf32> -> vector<16x1xf32>
    %56 = vector.broadcast %55 : vector<16x1xf32> to vector<16x16xf32>
    %57 = arith.mulf %52, %56 : vector<16x16xf32>
    %cst_24 = arith.constant dense<0.000000e+00> : vector<16x8xf32>
    %58 = tpu.matmul %57, %42, %cst_24 {dimension_numbers = #tpu.dot_dimension_numbers<[1], [0], [0], [1], [0, 0, 1, 1], [], []>} : vector<16x16xf32>, vector<16x8xf32>, vector<16x8xf32> -> vector<16x8xf32>
    %59 = vector.extract_strided_slice %35 {offsets = [0, 0], sizes = [8, 32], strides = [1, 1]} : vector<32x32xf32> to vector<8x32xf32>
    %cst_25 = arith.constant dense<0.000000e+00> : vector<16x32xf32>
    %60 = tpu.matmul %58, %59, %cst_25 {dimension_numbers = #tpu.dot_dimension_numbers<[1], [0], [0], [1], [0, 0, 1, 1], [], []>} : vector<16x8xf32>, vector<8x32xf32>, vector<16x32xf32> -> vector<16x32xf32>
    %61 = arith.addf %39, %60 : vector<16x32xf32>
    %62 = vector.extract_strided_slice %33 {offsets = [0, 8], sizes = [16, 8], strides = [1, 1]} : vector<16x96xf32> to vector<16x8xf32>
    %63 = vector.extract_strided_slice %33 {offsets = [0, 40], sizes = [16, 8], strides = [1, 1]} : vector<16x96xf32> to vector<16x8xf32>
    %64 = vector.extract_strided_slice %33 {offsets = [0, 72], sizes = [16, 8], strides = [1, 1]} : vector<16x96xf32> to vector<16x8xf32>
    %cst_26 = arith.constant dense<0.000000e+00> : vector<16x16xf32>
    %65 = tpu.matmul %62, %63, %cst_26 {dimension_numbers = #tpu.dot_dimension_numbers<[1], [1], [0], [0], [0, 0, 1, 0], [], []>} : vector<16x8xf32>, vector<16x8xf32>, vector<16x16xf32> -> vector<16x16xf32>
    %cst_27 = arith.constant 0.353553385 : f32
    %66 = vector.broadcast %cst_27 : f32 to vector<16x16xf32>
    %67 = arith.mulf %65, %66 : vector<16x16xf32>
    %cst_28 = arith.constant -1.000000e+30 : f32
    %68 = vector.broadcast %cst_28 : f32 to vector<16x16xf32>
    %69 = arith.select %30, %67, %68 : vector<16x16xi1>, vector<16x16xf32>
    %cst_29 = arith.constant dense<0xFF800000> : vector<16xf32>
    %70 = vector.multi_reduction <maximumf>, %69, %cst_29 [1] : vector<16x16xf32> to vector<16xf32>
    %71 = vector.shape_cast %70 : vector<16xf32> to vector<16x1xf32>
    %72 = vector.broadcast %71 : vector<16x1xf32> to vector<16x16xf32>
    %73 = arith.subf %69, %72 : vector<16x16xf32>
    %74 = math.exp %73 : vector<16x16xf32>
    %cst_30 = arith.constant dense<0.000000e+00> : vector<16xf32>
    %75 = vector.multi_reduction <add>, %74, %cst_30 [1] : vector<16x16xf32> to vector<16xf32>
    %76 = vector.shape_cast %75 : vector<16xf32> to vector<16x1xf32>
    %77 = tpu.reciprocal %76 {approx = true} : vector<16x1xf32> -> vector<16x1xf32>
    %78 = vector.broadcast %77 : vector<16x1xf32> to vector<16x16xf32>
    %79 = arith.mulf %74, %78 : vector<16x16xf32>
    %cst_31 = arith.constant dense<0.000000e+00> : vector<16x8xf32>
    %80 = tpu.matmul %79, %64, %cst_31 {dimension_numbers = #tpu.dot_dimension_numbers<[1], [0], [0], [1], [0, 0, 1, 1], [], []>} : vector<16x16xf32>, vector<16x8xf32>, vector<16x8xf32> -> vector<16x8xf32>
    %81 = vector.extract_strided_slice %35 {offsets = [8, 0], sizes = [8, 32], strides = [1, 1]} : vector<32x32xf32> to vector<8x32xf32>
    %cst_32 = arith.constant dense<0.000000e+00> : vector<16x32xf32>
    %82 = tpu.matmul %80, %81, %cst_32 {dimension_numbers = #tpu.dot_dimension_numbers<[1], [0], [0], [1], [0, 0, 1, 1], [], []>} : vector<16x8xf32>, vector<8x32xf32>, vector<16x32xf32> -> vector<16x32xf32>
    %83 = arith.addf %61, %82 : vector<16x32xf32>
    %84 = vector.extract_strided_slice %33 {offsets = [0, 16], sizes = [16, 8], strides = [1, 1]} : vector<16x96xf32> to vector<16x8xf32>
    %85 = vector.extract_strided_slice %33 {offsets = [0, 48], sizes = [16, 8], strides = [1, 1]} : vector<16x96xf32> to vector<16x8xf32>
    %86 = vector.extract_strided_slice %33 {offsets = [0, 80], sizes = [16, 8], strides = [1, 1]} : vector<16x96xf32> to vector<16x8xf32>
    %cst_33 = arith.constant dense<0.000000e+00> : vector<16x16xf32>
    %87 = tpu.matmul %84, %85, %cst_33 {dimension_numbers = #tpu.dot_dimension_numbers<[1], [1], [0], [0], [0, 0, 1, 0], [], []>} : vector<16x8xf32>, vector<16x8xf32>, vector<16x16xf32> -> vector<16x16xf32>
    %cst_34 = arith.constant 0.353553385 : f32
    %88 = vector.broadcast %cst_34 : f32 to vector<16x16xf32>
    %89 = arith.mulf %87, %88 : vector<16x16xf32>
    %cst_35 = arith.constant -1.000000e+30 : f32
    %90 = vector.broadcast %cst_35 : f32 to vector<16x16xf32>
    %91 = arith.select %30, %89, %90 : vector<16x16xi1>, vector<16x16xf32>
    %cst_36 = arith.constant dense<0xFF800000> : vector<16xf32>
    %92 = vector.multi_reduction <maximumf>, %91, %cst_36 [1] : vector<16x16xf32> to vector<16xf32>
    %93 = vector.shape_cast %92 : vector<16xf32> to vector<16x1xf32>
    %94 = vector.broadcast %93 : vector<16x1xf32> to vector<16x16xf32>
    %95 = arith.subf %91, %94 : vector<16x16xf32>
    %96 = math.exp %95 : vector<16x16xf32>
    %cst_37 = arith.constant dense<0.000000e+00> : vector<16xf32>
    %97 = vector.multi_reduction <add>, %96, %cst_37 [1] : vector<16x16xf32> to vector<16xf32>
    %98 = vector.shape_cast %97 : vector<16xf32> to vector<16x1xf32>
    %99 = tpu.reciprocal %98 {approx = true} : vector<16x1xf32> -> vector<16x1xf32>
    %100 = vector.broadcast %99 : vector<16x1xf32> to vector<16x16xf32>
    %101 = arith.mulf %96, %100 : vector<16x16xf32>
    %cst_38 = arith.constant dense<0.000000e+00> : vector<16x8xf32>
    %102 = tpu.matmul %101, %86, %cst_38 {dimension_numbers = #tpu.dot_dimension_numbers<[1], [0], [0], [1], [0, 0, 1, 1], [], []>} : vector<16x16xf32>, vector<16x8xf32>, vector<16x8xf32> -> vector<16x8xf32>
    %103 = vector.extract_strided_slice %35 {offsets = [16, 0], sizes = [8, 32], strides = [1, 1]} : vector<32x32xf32> to vector<8x32xf32>
    %cst_39 = arith.constant dense<0.000000e+00> : vector<16x32xf32>
    %104 = tpu.matmul %102, %103, %cst_39 {dimension_numbers = #tpu.dot_dimension_numbers<[1], [0], [0], [1], [0, 0, 1, 1], [], []>} : vector<16x8xf32>, vector<8x32xf32>, vector<16x32xf32> -> vector<16x32xf32>
    %105 = arith.addf %83, %104 : vector<16x32xf32>
    %106 = vector.extract_strided_slice %33 {offsets = [0, 24], sizes = [16, 8], strides = [1, 1]} : vector<16x96xf32> to vector<16x8xf32>
    %107 = vector.extract_strided_slice %33 {offsets = [0, 56], sizes = [16, 8], strides = [1, 1]} : vector<16x96xf32> to vector<16x8xf32>
    %108 = vector.extract_strided_slice %33 {offsets = [0, 88], sizes = [16, 8], strides = [1, 1]} : vector<16x96xf32> to vector<16x8xf32>
    %cst_40 = arith.constant dense<0.000000e+00> : vector<16x16xf32>
    %109 = tpu.matmul %106, %107, %cst_40 {dimension_numbers = #tpu.dot_dimension_numbers<[1], [1], [0], [0], [0, 0, 1, 0], [], []>} : vector<16x8xf32>, vector<16x8xf32>, vector<16x16xf32> -> vector<16x16xf32>
    %cst_41 = arith.constant 0.353553385 : f32
    %110 = vector.broadcast %cst_41 : f32 to vector<16x16xf32>
    %111 = arith.mulf %109, %110 : vector<16x16xf32>
    %cst_42 = arith.constant -1.000000e+30 : f32
    %112 = vector.broadcast %cst_42 : f32 to vector<16x16xf32>
    %113 = arith.select %30, %111, %112 : vector<16x16xi1>, vector<16x16xf32>
    %cst_43 = arith.constant dense<0xFF800000> : vector<16xf32>
    %114 = vector.multi_reduction <maximumf>, %113, %cst_43 [1] : vector<16x16xf32> to vector<16xf32>
    %115 = vector.shape_cast %114 : vector<16xf32> to vector<16x1xf32>
    %116 = vector.broadcast %115 : vector<16x1xf32> to vector<16x16xf32>
    %117 = arith.subf %113, %116 : vector<16x16xf32>
    %118 = math.exp %117 : vector<16x16xf32>
    %cst_44 = arith.constant dense<0.000000e+00> : vector<16xf32>
    %119 = vector.multi_reduction <add>, %118, %cst_44 [1] : vector<16x16xf32> to vector<16xf32>
    %120 = vector.shape_cast %119 : vector<16xf32> to vector<16x1xf32>
    %121 = tpu.reciprocal %120 {approx = true} : vector<16x1xf32> -> vector<16x1xf32>
    %122 = vector.broadcast %121 : vector<16x1xf32> to vector<16x16xf32>
    %123 = arith.mulf %118, %122 : vector<16x16xf32>
    %cst_45 = arith.constant dense<0.000000e+00> : vector<16x8xf32>
    %124 = tpu.matmul %123, %108, %cst_45 {dimension_numbers = #tpu.dot_dimension_numbers<[1], [0], [0], [1], [0, 0, 1, 1], [], []>} : vector<16x16xf32>, vector<16x8xf32>, vector<16x8xf32> -> vector<16x8xf32>
    %125 = vector.extract_strided_slice %35 {offsets = [24, 0], sizes = [8, 32], strides = [1, 1]} : vector<32x32xf32> to vector<8x32xf32>
    %cst_46 = arith.constant dense<0.000000e+00> : vector<16x32xf32>
    %126 = tpu.matmul %124, %125, %cst_46 {dimension_numbers = #tpu.dot_dimension_numbers<[1], [0], [0], [1], [0, 0, 1, 1], [], []>} : vector<16x8xf32>, vector<8x32xf32>, vector<16x32xf32> -> vector<16x32xf32>
    %127 = arith.addf %105, %126 : vector<16x32xf32>
    %128 = arith.addf %17, %127 : vector<16x32xf32>
    %c0_47 = arith.constant 0 : index
    %c0_48 = arith.constant 0 : index
    %c0_49 = arith.constant 0 : index
    %129 = vector.load %arg6[%c0_47, %c0_48, %c0_49] : memref<2x1x32xf32, #tpu.memory_space<vmem>>, vector<1x1x32xf32>
    %130 = vector.shape_cast %129 : vector<1x1x32xf32> to vector<1x32xf32>
    %c0_50 = arith.constant 0 : index
    %c0_51 = arith.constant 0 : index
    %c0_52 = arith.constant 0 : index
    %131 = vector.load %arg7[%c0_50, %c0_51, %c0_52] : memref<2x1x32xf32, #tpu.memory_space<vmem>>, vector<1x1x32xf32>
    %132 = vector.shape_cast %131 : vector<1x1x32xf32> to vector<1x32xf32>
    %cst_53 = arith.constant dense<0.000000e+00> : vector<16xf32>
    %133 = vector.multi_reduction <add>, %128, %cst_53 [1] : vector<16x32xf32> to vector<16xf32>
    %134 = vector.shape_cast %133 : vector<16xf32> to vector<16x1xf32>
    %cst_54 = arith.constant 3.200000e+01 : f32
    %135 = vector.broadcast %cst_54 : f32 to vector<16x1xf32>
    %136 = arith.divf %134, %135 : vector<16x1xf32>
    %137 = vector.broadcast %136 : vector<16x1xf32> to vector<16x32xf32>
    %138 = arith.subf %128, %137 : vector<16x32xf32>
    %139 = arith.mulf %138, %138 : vector<16x32xf32>
    %cst_55 = arith.constant dense<0.000000e+00> : vector<16xf32>
    %140 = vector.multi_reduction <add>, %139, %cst_55 [1] : vector<16x32xf32> to vector<16xf32>
    %141 = vector.shape_cast %140 : vector<16xf32> to vector<16x1xf32>
    %cst_56 = arith.constant 3.200000e+01 : f32
    %142 = vector.broadcast %cst_56 : f32 to vector<16x1xf32>
    %143 = arith.divf %141, %142 : vector<16x1xf32>
    %144 = vector.broadcast %136 : vector<16x1xf32> to vector<16x32xf32>
    %145 = arith.subf %128, %144 : vector<16x32xf32>
    %cst_57 = arith.constant 9.99999974E-6 : f32
    %146 = vector.broadcast %cst_57 : f32 to vector<16x1xf32>
    %147 = arith.addf %143, %146 : vector<16x1xf32>
    %148 = math.rsqrt %147 : vector<16x1xf32>
    %149 = vector.broadcast %148 : vector<16x1xf32> to vector<16x32xf32>
    %150 = arith.mulf %145, %149 : vector<16x32xf32>
    %151 = vector.broadcast %130 : vector<1x32xf32> to vector<16x32xf32>
    %152 = arith.mulf %150, %151 : vector<16x32xf32>
    %153 = vector.broadcast %132 : vector<1x32xf32> to vector<16x32xf32>
    %154 = arith.addf %152, %153 : vector<16x32xf32>
    %c0_58 = arith.constant 0 : index
    %c0_59 = arith.constant 0 : index
    %c0_60 = arith.constant 0 : index
    %155 = vector.load %arg8[%c0_58, %c0_59, %c0_60] : memref<2x32x128xf32, #tpu.memory_space<vmem>>, vector<1x32x128xf32>
    %156 = vector.shape_cast %155 : vector<1x32x128xf32> to vector<32x128xf32>
    %cst_61 = arith.constant dense<0.000000e+00> : vector<16x128xf32>
    %157 = tpu.matmul %154, %156, %cst_61 {dimension_numbers = #tpu.dot_dimension_numbers<[1], [0], [0], [1], [0, 0, 1, 1], [], []>} : vector<16x32xf32>, vector<32x128xf32>, vector<16x128xf32> -> vector<16x128xf32>
    %c0_62 = arith.constant 0 : index
    %c0_63 = arith.constant 0 : index
    %c0_64 = arith.constant 0 : index
    %158 = vector.load %arg9[%c0_62, %c0_63, %c0_64] : memref<2x1x128xf32, #tpu.memory_space<vmem>>, vector<1x1x128xf32>
    %159 = vector.shape_cast %158 : vector<1x1x128xf32> to vector<1x128xf32>
    %160 = vector.broadcast %159 : vector<1x128xf32> to vector<16x128xf32>
    %161 = arith.addf %157, %160 : vector<16x128xf32>
    %cst_65 = arith.constant 0.000000e+00 : f32
    %162 = vector.broadcast %cst_65 : f32 to vector<16x128xf32>
    %163 = arith.maximumf %161, %162 : vector<16x128xf32>
    %c0_66 = arith.constant 0 : index
    %c0_67 = arith.constant 0 : index
    %c0_68 = arith.constant 0 : index
    %164 = vector.load %arg10[%c0_66, %c0_67, %c0_68] : memref<2x128x32xf32, #tpu.memory_space<vmem>>, vector<1x128x32xf32>
    %165 = vector.shape_cast %164 : vector<1x128x32xf32> to vector<128x32xf32>
    %cst_69 = arith.constant dense<0.000000e+00> : vector<16x32xf32>
    %166 = tpu.matmul %163, %165, %cst_69 {dimension_numbers = #tpu.dot_dimension_numbers<[1], [0], [0], [1], [0, 0, 1, 1], [], []>} : vector<16x128xf32>, vector<128x32xf32>, vector<16x32xf32> -> vector<16x32xf32>
    %c0_70 = arith.constant 0 : index
    %c0_71 = arith.constant 0 : index
    %c0_72 = arith.constant 0 : index
    %167 = vector.load %arg11[%c0_70, %c0_71, %c0_72] : memref<2x1x32xf32, #tpu.memory_space<vmem>>, vector<1x1x32xf32>
    %168 = vector.shape_cast %167 : vector<1x1x32xf32> to vector<1x32xf32>
    %169 = vector.broadcast %168 : vector<1x32xf32> to vector<16x32xf32>
    %170 = arith.addf %166, %169 : vector<16x32xf32>
    %171 = arith.addf %154, %170 : vector<16x32xf32>
    %c0_73 = arith.constant 0 : index
    %c0_74 = arith.constant 0 : index
    %c0_75 = arith.constant 0 : index
    %172 = vector.load %arg12[%c0_73, %c0_74, %c0_75] : memref<2x1x32xf32, #tpu.memory_space<vmem>>, vector<1x1x32xf32>
    %173 = vector.shape_cast %172 : vector<1x1x32xf32> to vector<1x32xf32>
    %c0_76 = arith.constant 0 : index
    %c0_77 = arith.constant 0 : index
    %c0_78 = arith.constant 0 : index
    %174 = vector.load %arg13[%c0_76, %c0_77, %c0_78] : memref<2x1x32xf32, #tpu.memory_space<vmem>>, vector<1x1x32xf32>
    %175 = vector.shape_cast %174 : vector<1x1x32xf32> to vector<1x32xf32>
    %cst_79 = arith.constant dense<0.000000e+00> : vector<16xf32>
    %176 = vector.multi_reduction <add>, %171, %cst_79 [1] : vector<16x32xf32> to vector<16xf32>
    %177 = vector.shape_cast %176 : vector<16xf32> to vector<16x1xf32>
    %cst_80 = arith.constant 3.200000e+01 : f32
    %178 = vector.broadcast %cst_80 : f32 to vector<16x1xf32>
    %179 = arith.divf %177, %178 : vector<16x1xf32>
    %180 = vector.broadcast %179 : vector<16x1xf32> to vector<16x32xf32>
    %181 = arith.subf %171, %180 : vector<16x32xf32>
    %182 = arith.mulf %181, %181 : vector<16x32xf32>
    %cst_81 = arith.constant dense<0.000000e+00> : vector<16xf32>
    %183 = vector.multi_reduction <add>, %182, %cst_81 [1] : vector<16x32xf32> to vector<16xf32>
    %184 = vector.shape_cast %183 : vector<16xf32> to vector<16x1xf32>
    %cst_82 = arith.constant 3.200000e+01 : f32
    %185 = vector.broadcast %cst_82 : f32 to vector<16x1xf32>
    %186 = arith.divf %184, %185 : vector<16x1xf32>
    %187 = vector.broadcast %179 : vector<16x1xf32> to vector<16x32xf32>
    %188 = arith.subf %171, %187 : vector<16x32xf32>
    %cst_83 = arith.constant 9.99999974E-6 : f32
    %189 = vector.broadcast %cst_83 : f32 to vector<16x1xf32>
    %190 = arith.addf %186, %189 : vector<16x1xf32>
    %191 = math.rsqrt %190 : vector<16x1xf32>
    %192 = vector.broadcast %191 : vector<16x1xf32> to vector<16x32xf32>
    %193 = arith.mulf %188, %192 : vector<16x32xf32>
    %194 = vector.broadcast %173 : vector<1x32xf32> to vector<16x32xf32>
    %195 = arith.mulf %193, %194 : vector<16x32xf32>
    %196 = vector.broadcast %175 : vector<1x32xf32> to vector<16x32xf32>
    %197 = arith.addf %195, %196 : vector<16x32xf32>
    %c1 = arith.constant 1 : index
    %c0_84 = arith.constant 0 : index
    %c0_85 = arith.constant 0 : index
    %198 = vector.load %arg3[%c1, %c0_84, %c0_85] : memref<2x32x96xf32, #tpu.memory_space<vmem>>, vector<1x32x96xf32>
    %199 = vector.shape_cast %198 : vector<1x32x96xf32> to vector<32x96xf32>
    %cst_86 = arith.constant dense<0.000000e+00> : vector<16x96xf32>
    %200 = tpu.matmul %197, %199, %cst_86 {dimension_numbers = #tpu.dot_dimension_numbers<[1], [0], [0], [1], [0, 0, 1, 1], [], []>} : vector<16x32xf32>, vector<32x96xf32>, vector<16x96xf32> -> vector<16x96xf32>
    %c1_87 = arith.constant 1 : index
    %c0_88 = arith.constant 0 : index
    %c0_89 = arith.constant 0 : index
    %201 = vector.load %arg4[%c1_87, %c0_88, %c0_89] : memref<2x32x32xf32, #tpu.memory_space<vmem>>, vector<1x32x32xf32>
    %202 = vector.shape_cast %201 : vector<1x32x32xf32> to vector<32x32xf32>
    %c1_90 = arith.constant 1 : index
    %c0_91 = arith.constant 0 : index
    %c0_92 = arith.constant 0 : index
    %203 = vector.load %arg5[%c1_90, %c0_91, %c0_92] : memref<2x1x32xf32, #tpu.memory_space<vmem>>, vector<1x1x32xf32>
    %204 = vector.shape_cast %203 : vector<1x1x32xf32> to vector<1x32xf32>
    %205 = vector.shape_cast %204 : vector<1x32xf32> to vector<1x32xf32>
    %206 = vector.broadcast %205 : vector<1x32xf32> to vector<16x32xf32>
    %207 = vector.extract_strided_slice %200 {offsets = [0, 0], sizes = [16, 8], strides = [1, 1]} : vector<16x96xf32> to vector<16x8xf32>
    %208 = vector.extract_strided_slice %200 {offsets = [0, 32], sizes = [16, 8], strides = [1, 1]} : vector<16x96xf32> to vector<16x8xf32>
    %209 = vector.extract_strided_slice %200 {offsets = [0, 64], sizes = [16, 8], strides = [1, 1]} : vector<16x96xf32> to vector<16x8xf32>
    %cst_93 = arith.constant dense<0.000000e+00> : vector<16x16xf32>
    %210 = tpu.matmul %207, %208, %cst_93 {dimension_numbers = #tpu.dot_dimension_numbers<[1], [1], [0], [0], [0, 0, 1, 0], [], []>} : vector<16x8xf32>, vector<16x8xf32>, vector<16x16xf32> -> vector<16x16xf32>
    %cst_94 = arith.constant 0.353553385 : f32
    %211 = vector.broadcast %cst_94 : f32 to vector<16x16xf32>
    %212 = arith.mulf %210, %211 : vector<16x16xf32>
    %cst_95 = arith.constant -1.000000e+30 : f32
    %213 = vector.broadcast %cst_95 : f32 to vector<16x16xf32>
    %214 = arith.select %30, %212, %213 : vector<16x16xi1>, vector<16x16xf32>
    %cst_96 = arith.constant dense<0xFF800000> : vector<16xf32>
    %215 = vector.multi_reduction <maximumf>, %214, %cst_96 [1] : vector<16x16xf32> to vector<16xf32>
    %216 = vector.shape_cast %215 : vector<16xf32> to vector<16x1xf32>
    %217 = vector.broadcast %216 : vector<16x1xf32> to vector<16x16xf32>
    %218 = arith.subf %214, %217 : vector<16x16xf32>
    %219 = math.exp %218 : vector<16x16xf32>
    %cst_97 = arith.constant dense<0.000000e+00> : vector<16xf32>
    %220 = vector.multi_reduction <add>, %219, %cst_97 [1] : vector<16x16xf32> to vector<16xf32>
    %221 = vector.shape_cast %220 : vector<16xf32> to vector<16x1xf32>
    %222 = tpu.reciprocal %221 {approx = true} : vector<16x1xf32> -> vector<16x1xf32>
    %223 = vector.broadcast %222 : vector<16x1xf32> to vector<16x16xf32>
    %224 = arith.mulf %219, %223 : vector<16x16xf32>
    %cst_98 = arith.constant dense<0.000000e+00> : vector<16x8xf32>
    %225 = tpu.matmul %224, %209, %cst_98 {dimension_numbers = #tpu.dot_dimension_numbers<[1], [0], [0], [1], [0, 0, 1, 1], [], []>} : vector<16x16xf32>, vector<16x8xf32>, vector<16x8xf32> -> vector<16x8xf32>
    %226 = vector.extract_strided_slice %202 {offsets = [0, 0], sizes = [8, 32], strides = [1, 1]} : vector<32x32xf32> to vector<8x32xf32>
    %cst_99 = arith.constant dense<0.000000e+00> : vector<16x32xf32>
    %227 = tpu.matmul %225, %226, %cst_99 {dimension_numbers = #tpu.dot_dimension_numbers<[1], [0], [0], [1], [0, 0, 1, 1], [], []>} : vector<16x8xf32>, vector<8x32xf32>, vector<16x32xf32> -> vector<16x32xf32>
    %228 = arith.addf %206, %227 : vector<16x32xf32>
    %229 = vector.extract_strided_slice %200 {offsets = [0, 8], sizes = [16, 8], strides = [1, 1]} : vector<16x96xf32> to vector<16x8xf32>
    %230 = vector.extract_strided_slice %200 {offsets = [0, 40], sizes = [16, 8], strides = [1, 1]} : vector<16x96xf32> to vector<16x8xf32>
    %231 = vector.extract_strided_slice %200 {offsets = [0, 72], sizes = [16, 8], strides = [1, 1]} : vector<16x96xf32> to vector<16x8xf32>
    %cst_100 = arith.constant dense<0.000000e+00> : vector<16x16xf32>
    %232 = tpu.matmul %229, %230, %cst_100 {dimension_numbers = #tpu.dot_dimension_numbers<[1], [1], [0], [0], [0, 0, 1, 0], [], []>} : vector<16x8xf32>, vector<16x8xf32>, vector<16x16xf32> -> vector<16x16xf32>
    %cst_101 = arith.constant 0.353553385 : f32
    %233 = vector.broadcast %cst_101 : f32 to vector<16x16xf32>
    %234 = arith.mulf %232, %233 : vector<16x16xf32>
    %cst_102 = arith.constant -1.000000e+30 : f32
    %235 = vector.broadcast %cst_102 : f32 to vector<16x16xf32>
    %236 = arith.select %30, %234, %235 : vector<16x16xi1>, vector<16x16xf32>
    %cst_103 = arith.constant dense<0xFF800000> : vector<16xf32>
    %237 = vector.multi_reduction <maximumf>, %236, %cst_103 [1] : vector<16x16xf32> to vector<16xf32>
    %238 = vector.shape_cast %237 : vector<16xf32> to vector<16x1xf32>
    %239 = vector.broadcast %238 : vector<16x1xf32> to vector<16x16xf32>
    %240 = arith.subf %236, %239 : vector<16x16xf32>
    %241 = math.exp %240 : vector<16x16xf32>
    %cst_104 = arith.constant dense<0.000000e+00> : vector<16xf32>
    %242 = vector.multi_reduction <add>, %241, %cst_104 [1] : vector<16x16xf32> to vector<16xf32>
    %243 = vector.shape_cast %242 : vector<16xf32> to vector<16x1xf32>
    %244 = tpu.reciprocal %243 {approx = true} : vector<16x1xf32> -> vector<16x1xf32>
    %245 = vector.broadcast %244 : vector<16x1xf32> to vector<16x16xf32>
    %246 = arith.mulf %241, %245 : vector<16x16xf32>
    %cst_105 = arith.constant dense<0.000000e+00> : vector<16x8xf32>
    %247 = tpu.matmul %246, %231, %cst_105 {dimension_numbers = #tpu.dot_dimension_numbers<[1], [0], [0], [1], [0, 0, 1, 1], [], []>} : vector<16x16xf32>, vector<16x8xf32>, vector<16x8xf32> -> vector<16x8xf32>
    %248 = vector.extract_strided_slice %202 {offsets = [8, 0], sizes = [8, 32], strides = [1, 1]} : vector<32x32xf32> to vector<8x32xf32>
    %cst_106 = arith.constant dense<0.000000e+00> : vector<16x32xf32>
    %249 = tpu.matmul %247, %248, %cst_106 {dimension_numbers = #tpu.dot_dimension_numbers<[1], [0], [0], [1], [0, 0, 1, 1], [], []>} : vector<16x8xf32>, vector<8x32xf32>, vector<16x32xf32> -> vector<16x32xf32>
    %250 = arith.addf %228, %249 : vector<16x32xf32>
    %251 = vector.extract_strided_slice %200 {offsets = [0, 16], sizes = [16, 8], strides = [1, 1]} : vector<16x96xf32> to vector<16x8xf32>
    %252 = vector.extract_strided_slice %200 {offsets = [0, 48], sizes = [16, 8], strides = [1, 1]} : vector<16x96xf32> to vector<16x8xf32>
    %253 = vector.extract_strided_slice %200 {offsets = [0, 80], sizes = [16, 8], strides = [1, 1]} : vector<16x96xf32> to vector<16x8xf32>
    %cst_107 = arith.constant dense<0.000000e+00> : vector<16x16xf32>
    %254 = tpu.matmul %251, %252, %cst_107 {dimension_numbers = #tpu.dot_dimension_numbers<[1], [1], [0], [0], [0, 0, 1, 0], [], []>} : vector<16x8xf32>, vector<16x8xf32>, vector<16x16xf32> -> vector<16x16xf32>
    %cst_108 = arith.constant 0.353553385 : f32
    %255 = vector.broadcast %cst_108 : f32 to vector<16x16xf32>
    %256 = arith.mulf %254, %255 : vector<16x16xf32>
    %cst_109 = arith.constant -1.000000e+30 : f32
    %257 = vector.broadcast %cst_109 : f32 to vector<16x16xf32>
    %258 = arith.select %30, %256, %257 : vector<16x16xi1>, vector<16x16xf32>
    %cst_110 = arith.constant dense<0xFF800000> : vector<16xf32>
    %259 = vector.multi_reduction <maximumf>, %258, %cst_110 [1] : vector<16x16xf32> to vector<16xf32>
    %260 = vector.shape_cast %259 : vector<16xf32> to vector<16x1xf32>
    %261 = vector.broadcast %260 : vector<16x1xf32> to vector<16x16xf32>
    %262 = arith.subf %258, %261 : vector<16x16xf32>
    %263 = math.exp %262 : vector<16x16xf32>
    %cst_111 = arith.constant dense<0.000000e+00> : vector<16xf32>
    %264 = vector.multi_reduction <add>, %263, %cst_111 [1] : vector<16x16xf32> to vector<16xf32>
    %265 = vector.shape_cast %264 : vector<16xf32> to vector<16x1xf32>
    %266 = tpu.reciprocal %265 {approx = true} : vector<16x1xf32> -> vector<16x1xf32>
    %267 = vector.broadcast %266 : vector<16x1xf32> to vector<16x16xf32>
    %268 = arith.mulf %263, %267 : vector<16x16xf32>
    %cst_112 = arith.constant dense<0.000000e+00> : vector<16x8xf32>
    %269 = tpu.matmul %268, %253, %cst_112 {dimension_numbers = #tpu.dot_dimension_numbers<[1], [0], [0], [1], [0, 0, 1, 1], [], []>} : vector<16x16xf32>, vector<16x8xf32>, vector<16x8xf32> -> vector<16x8xf32>
    %270 = vector.extract_strided_slice %202 {offsets = [16, 0], sizes = [8, 32], strides = [1, 1]} : vector<32x32xf32> to vector<8x32xf32>
    %cst_113 = arith.constant dense<0.000000e+00> : vector<16x32xf32>
    %271 = tpu.matmul %269, %270, %cst_113 {dimension_numbers = #tpu.dot_dimension_numbers<[1], [0], [0], [1], [0, 0, 1, 1], [], []>} : vector<16x8xf32>, vector<8x32xf32>, vector<16x32xf32> -> vector<16x32xf32>
    %272 = arith.addf %250, %271 : vector<16x32xf32>
    %273 = vector.extract_strided_slice %200 {offsets = [0, 24], sizes = [16, 8], strides = [1, 1]} : vector<16x96xf32> to vector<16x8xf32>
    %274 = vector.extract_strided_slice %200 {offsets = [0, 56], sizes = [16, 8], strides = [1, 1]} : vector<16x96xf32> to vector<16x8xf32>
    %275 = vector.extract_strided_slice %200 {offsets = [0, 88], sizes = [16, 8], strides = [1, 1]} : vector<16x96xf32> to vector<16x8xf32>
    %cst_114 = arith.constant dense<0.000000e+00> : vector<16x16xf32>
    %276 = tpu.matmul %273, %274, %cst_114 {dimension_numbers = #tpu.dot_dimension_numbers<[1], [1], [0], [0], [0, 0, 1, 0], [], []>} : vector<16x8xf32>, vector<16x8xf32>, vector<16x16xf32> -> vector<16x16xf32>
    %cst_115 = arith.constant 0.353553385 : f32
    %277 = vector.broadcast %cst_115 : f32 to vector<16x16xf32>
    %278 = arith.mulf %276, %277 : vector<16x16xf32>
    %cst_116 = arith.constant -1.000000e+30 : f32
    %279 = vector.broadcast %cst_116 : f32 to vector<16x16xf32>
    %280 = arith.select %30, %278, %279 : vector<16x16xi1>, vector<16x16xf32>
    %cst_117 = arith.constant dense<0xFF800000> : vector<16xf32>
    %281 = vector.multi_reduction <maximumf>, %280, %cst_117 [1] : vector<16x16xf32> to vector<16xf32>
    %282 = vector.shape_cast %281 : vector<16xf32> to vector<16x1xf32>
    %283 = vector.broadcast %282 : vector<16x1xf32> to vector<16x16xf32>
    %284 = arith.subf %280, %283 : vector<16x16xf32>
    %285 = math.exp %284 : vector<16x16xf32>
    %cst_118 = arith.constant dense<0.000000e+00> : vector<16xf32>
    %286 = vector.multi_reduction <add>, %285, %cst_118 [1] : vector<16x16xf32> to vector<16xf32>
    %287 = vector.shape_cast %286 : vector<16xf32> to vector<16x1xf32>
    %288 = tpu.reciprocal %287 {approx = true} : vector<16x1xf32> -> vector<16x1xf32>
    %289 = vector.broadcast %288 : vector<16x1xf32> to vector<16x16xf32>
    %290 = arith.mulf %285, %289 : vector<16x16xf32>
    %cst_119 = arith.constant dense<0.000000e+00> : vector<16x8xf32>
    %291 = tpu.matmul %290, %275, %cst_119 {dimension_numbers = #tpu.dot_dimension_numbers<[1], [0], [0], [1], [0, 0, 1, 1], [], []>} : vector<16x16xf32>, vector<16x8xf32>, vector<16x8xf32> -> vector<16x8xf32>
    %292 = vector.extract_strided_slice %202 {offsets = [24, 0], sizes = [8, 32], strides = [1, 1]} : vector<32x32xf32> to vector<8x32xf32>
    %cst_120 = arith.constant dense<0.000000e+00> : vector<16x32xf32>
    %293 = tpu.matmul %291, %292, %cst_120 {dimension_numbers = #tpu.dot_dimension_numbers<[1], [0], [0], [1], [0, 0, 1, 1], [], []>} : vector<16x8xf32>, vector<8x32xf32>, vector<16x32xf32> -> vector<16x32xf32>
    %294 = arith.addf %272, %293 : vector<16x32xf32>
    %295 = arith.addf %197, %294 : vector<16x32xf32>
    %c1_121 = arith.constant 1 : index
    %c0_122 = arith.constant 0 : index
    %c0_123 = arith.constant 0 : index
    %296 = vector.load %arg6[%c1_121, %c0_122, %c0_123] : memref<2x1x32xf32, #tpu.memory_space<vmem>>, vector<1x1x32xf32>
    %297 = vector.shape_cast %296 : vector<1x1x32xf32> to vector<1x32xf32>
    %c1_124 = arith.constant 1 : index
    %c0_125 = arith.constant 0 : index
    %c0_126 = arith.constant 0 : index
    %298 = vector.load %arg7[%c1_124, %c0_125, %c0_126] : memref<2x1x32xf32, #tpu.memory_space<vmem>>, vector<1x1x32xf32>
    %299 = vector.shape_cast %298 : vector<1x1x32xf32> to vector<1x32xf32>
    %cst_127 = arith.constant dense<0.000000e+00> : vector<16xf32>
    %300 = vector.multi_reduction <add>, %295, %cst_127 [1] : vector<16x32xf32> to vector<16xf32>
    %301 = vector.shape_cast %300 : vector<16xf32> to vector<16x1xf32>
    %cst_128 = arith.constant 3.200000e+01 : f32
    %302 = vector.broadcast %cst_128 : f32 to vector<16x1xf32>
    %303 = arith.divf %301, %302 : vector<16x1xf32>
    %304 = vector.broadcast %303 : vector<16x1xf32> to vector<16x32xf32>
    %305 = arith.subf %295, %304 : vector<16x32xf32>
    %306 = arith.mulf %305, %305 : vector<16x32xf32>
    %cst_129 = arith.constant dense<0.000000e+00> : vector<16xf32>
    %307 = vector.multi_reduction <add>, %306, %cst_129 [1] : vector<16x32xf32> to vector<16xf32>
    %308 = vector.shape_cast %307 : vector<16xf32> to vector<16x1xf32>
    %cst_130 = arith.constant 3.200000e+01 : f32
    %309 = vector.broadcast %cst_130 : f32 to vector<16x1xf32>
    %310 = arith.divf %308, %309 : vector<16x1xf32>
    %311 = vector.broadcast %303 : vector<16x1xf32> to vector<16x32xf32>
    %312 = arith.subf %295, %311 : vector<16x32xf32>
    %cst_131 = arith.constant 9.99999974E-6 : f32
    %313 = vector.broadcast %cst_131 : f32 to vector<16x1xf32>
    %314 = arith.addf %310, %313 : vector<16x1xf32>
    %315 = math.rsqrt %314 : vector<16x1xf32>
    %316 = vector.broadcast %315 : vector<16x1xf32> to vector<16x32xf32>
    %317 = arith.mulf %312, %316 : vector<16x32xf32>
    %318 = vector.broadcast %297 : vector<1x32xf32> to vector<16x32xf32>
    %319 = arith.mulf %317, %318 : vector<16x32xf32>
    %320 = vector.broadcast %299 : vector<1x32xf32> to vector<16x32xf32>
    %321 = arith.addf %319, %320 : vector<16x32xf32>
    %c1_132 = arith.constant 1 : index
    %c0_133 = arith.constant 0 : index
    %c0_134 = arith.constant 0 : index
    %322 = vector.load %arg8[%c1_132, %c0_133, %c0_134] : memref<2x32x128xf32, #tpu.memory_space<vmem>>, vector<1x32x128xf32>
    %323 = vector.shape_cast %322 : vector<1x32x128xf32> to vector<32x128xf32>
    %cst_135 = arith.constant dense<0.000000e+00> : vector<16x128xf32>
    %324 = tpu.matmul %321, %323, %cst_135 {dimension_numbers = #tpu.dot_dimension_numbers<[1], [0], [0], [1], [0, 0, 1, 1], [], []>} : vector<16x32xf32>, vector<32x128xf32>, vector<16x128xf32> -> vector<16x128xf32>
    %c1_136 = arith.constant 1 : index
    %c0_137 = arith.constant 0 : index
    %c0_138 = arith.constant 0 : index
    %325 = vector.load %arg9[%c1_136, %c0_137, %c0_138] : memref<2x1x128xf32, #tpu.memory_space<vmem>>, vector<1x1x128xf32>
    %326 = vector.shape_cast %325 : vector<1x1x128xf32> to vector<1x128xf32>
    %327 = vector.broadcast %326 : vector<1x128xf32> to vector<16x128xf32>
    %328 = arith.addf %324, %327 : vector<16x128xf32>
    %cst_139 = arith.constant 0.000000e+00 : f32
    %329 = vector.broadcast %cst_139 : f32 to vector<16x128xf32>
    %330 = arith.maximumf %328, %329 : vector<16x128xf32>
    %c1_140 = arith.constant 1 : index
    %c0_141 = arith.constant 0 : index
    %c0_142 = arith.constant 0 : index
    %331 = vector.load %arg10[%c1_140, %c0_141, %c0_142] : memref<2x128x32xf32, #tpu.memory_space<vmem>>, vector<1x128x32xf32>
    %332 = vector.shape_cast %331 : vector<1x128x32xf32> to vector<128x32xf32>
    %cst_143 = arith.constant dense<0.000000e+00> : vector<16x32xf32>
    %333 = tpu.matmul %330, %332, %cst_143 {dimension_numbers = #tpu.dot_dimension_numbers<[1], [0], [0], [1], [0, 0, 1, 1], [], []>} : vector<16x128xf32>, vector<128x32xf32>, vector<16x32xf32> -> vector<16x32xf32>
    %c1_144 = arith.constant 1 : index
    %c0_145 = arith.constant 0 : index
    %c0_146 = arith.constant 0 : index
    %334 = vector.load %arg11[%c1_144, %c0_145, %c0_146] : memref<2x1x32xf32, #tpu.memory_space<vmem>>, vector<1x1x32xf32>
    %335 = vector.shape_cast %334 : vector<1x1x32xf32> to vector<1x32xf32>
    %336 = vector.broadcast %335 : vector<1x32xf32> to vector<16x32xf32>
    %337 = arith.addf %333, %336 : vector<16x32xf32>
    %338 = arith.addf %321, %337 : vector<16x32xf32>
    %c1_147 = arith.constant 1 : index
    %c0_148 = arith.constant 0 : index
    %c0_149 = arith.constant 0 : index
    %339 = vector.load %arg12[%c1_147, %c0_148, %c0_149] : memref<2x1x32xf32, #tpu.memory_space<vmem>>, vector<1x1x32xf32>
    %340 = vector.shape_cast %339 : vector<1x1x32xf32> to vector<1x32xf32>
    %c1_150 = arith.constant 1 : index
    %c0_151 = arith.constant 0 : index
    %c0_152 = arith.constant 0 : index
    %341 = vector.load %arg13[%c1_150, %c0_151, %c0_152] : memref<2x1x32xf32, #tpu.memory_space<vmem>>, vector<1x1x32xf32>
    %342 = vector.shape_cast %341 : vector<1x1x32xf32> to vector<1x32xf32>
    %cst_153 = arith.constant dense<0.000000e+00> : vector<16xf32>
    %343 = vector.multi_reduction <add>, %338, %cst_153 [1] : vector<16x32xf32> to vector<16xf32>
    %344 = vector.shape_cast %343 : vector<16xf32> to vector<16x1xf32>
    %cst_154 = arith.constant 3.200000e+01 : f32
    %345 = vector.broadcast %cst_154 : f32 to vector<16x1xf32>
    %346 = arith.divf %344, %345 : vector<16x1xf32>
    %347 = vector.broadcast %346 : vector<16x1xf32> to vector<16x32xf32>
    %348 = arith.subf %338, %347 : vector<16x32xf32>
    %349 = arith.mulf %348, %348 : vector<16x32xf32>
    %cst_155 = arith.constant dense<0.000000e+00> : vector<16xf32>
    %350 = vector.multi_reduction <add>, %349, %cst_155 [1] : vector<16x32xf32> to vector<16xf32>
    %351 = vector.shape_cast %350 : vector<16xf32> to vector<16x1xf32>
    %cst_156 = arith.constant 3.200000e+01 : f32
    %352 = vector.broadcast %cst_156 : f32 to vector<16x1xf32>
    %353 = arith.divf %351, %352 : vector<16x1xf32>
    %354 = vector.broadcast %346 : vector<16x1xf32> to vector<16x32xf32>
    %355 = arith.subf %338, %354 : vector<16x32xf32>
    %cst_157 = arith.constant 9.99999974E-6 : f32
    %356 = vector.broadcast %cst_157 : f32 to vector<16x1xf32>
    %357 = arith.addf %353, %356 : vector<16x1xf32>
    %358 = math.rsqrt %357 : vector<16x1xf32>
    %359 = vector.broadcast %358 : vector<16x1xf32> to vector<16x32xf32>
    %360 = arith.mulf %355, %359 : vector<16x32xf32>
    %361 = vector.broadcast %340 : vector<1x32xf32> to vector<16x32xf32>
    %362 = arith.mulf %360, %361 : vector<16x32xf32>
    %363 = vector.broadcast %342 : vector<1x32xf32> to vector<16x32xf32>
    %364 = arith.addf %362, %363 : vector<16x32xf32>
    %c0_158 = arith.constant 0 : index
    %c0_159 = arith.constant 0 : index
    %365 = vector.load %arg14[%c0_158, %c0_159] : memref<1x32xf32, #tpu.memory_space<vmem>>, vector<1x32xf32>
    %c0_160 = arith.constant 0 : index
    %c0_161 = arith.constant 0 : index
    %366 = vector.load %arg15[%c0_160, %c0_161] : memref<1x32xf32, #tpu.memory_space<vmem>>, vector<1x32xf32>
    %cst_162 = arith.constant dense<0.000000e+00> : vector<16xf32>
    %367 = vector.multi_reduction <add>, %364, %cst_162 [1] : vector<16x32xf32> to vector<16xf32>
    %368 = vector.shape_cast %367 : vector<16xf32> to vector<16x1xf32>
    %cst_163 = arith.constant 3.200000e+01 : f32
    %369 = vector.broadcast %cst_163 : f32 to vector<16x1xf32>
    %370 = arith.divf %368, %369 : vector<16x1xf32>
    %371 = vector.broadcast %370 : vector<16x1xf32> to vector<16x32xf32>
    %372 = arith.subf %364, %371 : vector<16x32xf32>
    %373 = arith.mulf %372, %372 : vector<16x32xf32>
    %cst_164 = arith.constant dense<0.000000e+00> : vector<16xf32>
    %374 = vector.multi_reduction <add>, %373, %cst_164 [1] : vector<16x32xf32> to vector<16xf32>
    %375 = vector.shape_cast %374 : vector<16xf32> to vector<16x1xf32>
    %cst_165 = arith.constant 3.200000e+01 : f32
    %376 = vector.broadcast %cst_165 : f32 to vector<16x1xf32>
    %377 = arith.divf %375, %376 : vector<16x1xf32>
    %378 = vector.broadcast %370 : vector<16x1xf32> to vector<16x32xf32>
    %379 = arith.subf %364, %378 : vector<16x32xf32>
    %cst_166 = arith.constant 9.99999974E-6 : f32
    %380 = vector.broadcast %cst_166 : f32 to vector<16x1xf32>
    %381 = arith.addf %377, %380 : vector<16x1xf32>
    %382 = math.rsqrt %381 : vector<16x1xf32>
    %383 = vector.broadcast %382 : vector<16x1xf32> to vector<16x32xf32>
    %384 = arith.mulf %379, %383 : vector<16x32xf32>
    %385 = vector.broadcast %365 : vector<1x32xf32> to vector<16x32xf32>
    %386 = arith.mulf %384, %385 : vector<16x32xf32>
    %387 = vector.broadcast %366 : vector<1x32xf32> to vector<16x32xf32>
    %388 = arith.addf %386, %387 : vector<16x32xf32>
    %c0_167 = arith.constant 0 : index
    %c0_168 = arith.constant 0 : index
    %389 = vector.load %arg16[%c0_167, %c0_168] : memref<32x128xf32, #tpu.memory_space<vmem>>, vector<32x128xf32>
    %cst_169 = arith.constant dense<0.000000e+00> : vector<16x128xf32>
    %390 = tpu.matmul %388, %389, %cst_169 {dimension_numbers = #tpu.dot_dimension_numbers<[1], [0], [0], [1], [0, 0, 1, 1], [], []>} : vector<16x32xf32>, vector<32x128xf32>, vector<16x128xf32> -> vector<16x128xf32>
    %c0_170 = arith.constant 0 : index
    %c0_171 = arith.constant 0 : index
    %391 = vector.load %arg17[%c0_170, %c0_171] : memref<1x128xf32, #tpu.memory_space<vmem>>, vector<1x128xf32>
    %392 = vector.broadcast %391 : vector<1x128xf32> to vector<16x128xf32>
    %393 = arith.addf %390, %392 : vector<16x128xf32>
    %c0_172 = arith.constant 0 : index
    %c0_173 = arith.constant 0 : index
    %394 = vector.load %arg18[%c0_172, %c0_173] : memref<16x128xf32, #tpu.memory_space<vmem>>, vector<16x128xf32>
    tpu.vector_store %arg18[%c0_172, %c0_173], %393 {strides = array<i32>} : memref<16x128xf32, #tpu.memory_space<vmem>>, vector<16x128xf32>,
    return
  }
}

</mosaic_0001>

<bundles_post_ra>
// kernel: tpu_custom_call.1
= control target key start
LH: loop header
LB: loop body
LE: loop exit
PB: predicated region body
PF: predicated region fallthrough
CT: control target
= control target key end

     0   :  { %s5269_s0 = inlined_call_operand.vmem [shape: s32[16,1], index: 0, kind: input, shape index: {}]   ;;  %s5270_s1 = inlined_call_operand.vmem [shape: f32[128,32], index: 1, kind: input, shape index: {}]   ;;  %s5271_s2 = inlined_call_operand.vmem [shape: f32[8,32], index: 2, kind: input, shape index: {}]   ;;  %s5272_s3 = inlined_call_operand.vmem [shape: f32[2,32,96], index: 3, kind: input, shape index: {}]   ;;  %s5273_s4 = inlined_call_operand.vmem [shape: f32[2,32,32], index: 4, kind: input, shape index: {}]   ;;  %s5274_s5 = inlined_call_operand.vmem [shape: f32[2,1,32], index: 5, kind: input, shape index: {}]   ;;  %s5275_s6 = inlined_call_operand.vmem [shape: f32[2,1,32], index: 6, kind: input, shape index: {}]   ;;  %s5276_s7 = inlined_call_operand.vmem [shape: f32[2,1,32], index: 7, kind: input, shape index: {}]   ;;  %s5277_s8 = inlined_call_operand.vmem [shape: f32[2,32,128], index: 8, kind: input, shape index: {}]   ;;  %s5278_s9 = inlined_call_operand.vmem [shape: f32[2,1,128], index: 9, kind: input, shape index: {}]   ;;  %s5279_s10 = inlined_call_operand.vmem [shape: f32[2,128,32], index: 10, kind: input, shape index: {}]   ;;  %s5280_s11 = inlined_call_operand.vmem [shape: f32[2,1,32], index: 11, kind: input, shape index: {}]   ;;  %s5281_s12 = inlined_call_operand.vmem [shape: f32[2,1,32], index: 12, kind: input, shape index: {}]   ;;  %s5282_s13 = inlined_call_operand.vmem [shape: f32[2,1,32], index: 13, kind: input, shape index: {}]   ;;  %s5283_s14 = inlined_call_operand.vmem [shape: f32[1,32], index: 14, kind: input, shape index: {}]   ;;  %s5284_s15 = inlined_call_operand.vmem [shape: f32[1,32], index: 15, kind: input, shape index: {}]   ;;  %s5285_s16 = inlined_call_operand.vmem [shape: f32[32,128], index: 16, kind: input, shape index: {}]   ;;  %s5286_s17 = inlined_call_operand.vmem [shape: f32[1,128], index: 17, kind: input, shape index: {}]   ;;  %s5287_s18 = inlined_call_operand.hbm [shape: f32[16,128], index: 18, kind: output, shape index: {}]  }
   0x1   :  { %5297 = sst [smem:[#allocation5_spill]] %s5269_s0 }
   0x2   :  { %5298 = sst [smem:[#allocation6_spill]] %s5270_s1 }
   0x3   :  { %5299 = sst [smem:[#allocation7_spill]] %s5271_s2 }
   0x4   :  { %5300 = sst [smem:[#allocation8_spill]] %s5282_s13 }
   0x5   :  { %s5301_s29 = sld [smem:[#allocation5_spill]]  ;;  %s5302_s13 = sld [smem:[#allocation7_spill]]  ;;  %v62_v2 = vlaneseq  ;;  %v4557_v3 = vmov 0   ;;  %vm104_vm0 = vcmask 64512  }
   0x6   :  { %4368 = vset.pattern.permute.xlu0 %v4557_v3  ;;  %s5303_s20 = sld [smem:[#allocation6_spill]] }
   0x7   :  { %v4681_v6 = vand.u32 127, %v62_v2  ;;  %v93_v7 = vshrl.u32 %v62_v2, 7 }
   0x9   :  { %v94_v10 = vadd.s32 8, %v93_v7  ;;  %v95_v11 = vand.u32 7, %v93_v7  ;;  %v261_v12 = vshra.s32 %v93_v7, 3  ;;  %v263_v13 = vshra.s32 %v4681_v6, 3 }
   0xa   :  { %v264_v14 = vand.u32 7, %v4681_v6 }
   0xb   :  { %v60_v0 = vld [vmem:[%s5301_s29] sm:$0xff]  ;;  %v61_v9 = vld [vmem:[%s5301_s29 + $0x8] sm:$0xff]  ;;  %v96_v17 = vand.u32 7, %v94_v10  ;;  %vm97_vm1 = vcmp.eq.s32.totalorder %v95_v11, %v4681_v6  ;;  %v262_v18 = vshra.s32 %v94_v10, 3  ;;  %vm265_vm2 = vcmp.eq.s32.totalorder %v261_v12, %v263_v13 }
   0xc   :  { %v103_v1 = vld [vmem:[%s5302_s13] sm:$0xff]  ;;  %v77_v5 = vld [vmem:[%s5303_s20 + $0x8] sm:$0xff]  ;;  %65 = vperm.xlu0 %4368, %v60_v0   ;;  %v78_v15 = vld [vmem:[%s5303_s20 + $0x10] sm:$0xff] }
   0xd   :  { %3800 = vmatprep.subr.mxu0 %v103_v1  ;;  %v76_v4 = vld [vmem:[%s5303_s20] sm:$0xff]  ;;  %v79_v16 = vld [vmem:[%s5303_s20 + $0x18] sm:$0xff] }
   0xe   :  { %3801 = vmatpush3.msra.mxu0 %v103_v1  ;;  %v4117_v8 = vpack.c.bf16 %v77_v5, %v76_v4 }
  0x10   :  { %4118 = vmatprep.subr.bf16.mxu0 %v4117_v8  ;;  %68 = vperm.xlu0 %4368, %v61_v9  }
  0x11   :  { %23 = vsyncpa [#allocation3], 0  ;;  %v4558_v19 = vmov 0.0   ;;  %vm267_vm3 = vcmp.le.s32.totalorder %v264_v14, %v95_v11  ;;  %v271_v21 = vld [vmem:[%s5272_s3] sm:$0xff]  ;;  %v272_v22 = vld [vmem:[%s5272_s3 + $0x8] sm:$0xff]  ;;  %vm98_vm4 = vcmp.eq.s32.totalorder %v96_v17, %v4681_v6  ;;  %vm266_vm5 = vcmp.eq.s32.totalorder %v262_v18, %v263_v13  ;;  %s4561_s29 = smov 88  }
  0x12   :  { %v3493_v20 = vsel %vm97_vm1, 1.0, %v4558_v19  ;;  %v273_v23 = vld [vmem:[%s5272_s3 + $0x10] sm:$0xff]  ;;  %vm268_vm6 = vcmp.le.s32.totalorder %v264_v14, %v96_v17  ;;  %vm4706_vm7 = vmand %vm265_vm2, %vm267_vm3  ;;  %v4121_v25 = vpack.c.bf16 %v79_v16, %v78_v15  ;;  %v274_v26 = vld [vmem:[%s5272_s3 + $0x18] sm:$0xff]  ;;  %v3494_v27 = vsel %vm98_vm4, 1.0, %v4558_v19  ;;  %s4562_s30 = smov 120   ;;  %s4563_s0 = smov 64  }
  0x13   :  { %3802 = vmatprep.mubr.msk.f32.mxu0 %vm104_vm0, %v3493_v20  ;;  %vm4713_vm8 = vmand %vm266_vm5, %vm268_vm6  ;;  %v80_v29 = vld [vmem:[%s5303_s20 + $0x20] sm:$0xff]  ;;  %v81_v30 = vld [vmem:[%s5303_s20 + $0x28] sm:$0xff]  ;;  %v4149_v31 = vpack.c.bf16 %v272_v22, %v271_v21  ;;  %v4153_v32 = vpack.c.bf16 %v274_v26, %v273_v23  ;;  %v4559_v50 = vmov 1.0   ;;  %vm275_vm11 = vcmask 261120   ;;  %s5296_s21 = smov 80   ;;  %s4565_s22 = smov 112  }
  0x14   :  { %3803 = vmatmul.mubr.msk.f32.vlgmr.msra.gmra.mrb[0].mxu0 %vm104_vm0, %v3494_v27  ;;  %v4125_v33 = vpack.c.bf16 %v81_v30, %v80_v29  ;;  %v82_v34 = vld [vmem:[%s5303_s20 + $0x30] sm:$0xff]  ;;  %v83_v35 = vld [vmem:[%s5303_s20 + $0x38] sm:$0xff]  ;;  %v84_v37 = vld [vmem:[%s5303_s20 + $0x40] sm:$0xff]  ;;  %vm461_vm13 = vcmask 130048   ;;  %s4566_s2 = smov 56   ;;  %s5295_s13 = smov 72  }
  0x15   :  { %4120 = vmatpush3.bf16.msra.mxu0 %v4117_v8  ;;  %4150 = vmatprep.subr.bf16.mxu1 %v4149_v31  ;;  %v4129_v36 = vpack.c.bf16 %v83_v35, %v82_v34  ;;  %v85_v38 = vld [vmem:[%s5303_s20 + $0x48] sm:$0xff]  ;;  %v86_v40 = vld [vmem:[%s5303_s20 + $0x50] sm:$0xff]  ;;  %v87_v41 = vld [vmem:[%s5303_s20 + $0x58] sm:$0xff]  ;;  %s5293_s23 = smov 104   ;;  %s5292_s26 = smov 48  }
  0x16   :  { %4122 = vmatprep.subr.bf16.mxu0 %v4121_v25  ;;  %4152 = vmatpush3.bf16.msra.mxu1 %v4149_v31  ;;  %v4133_v39 = vpack.c.bf16 %v85_v38, %v84_v37  ;;  %v4137_v42 = vpack.c.bf16 %v87_v41, %v86_v40  ;;  %v88_v43 = vld [vmem:[%s5303_s20 + $0x60] sm:$0xff]  ;;  %v89_v44 = vld [vmem:[%s5303_s20 + $0x68] sm:$0xff]  ;;  %v90_v46 = vld [vmem:[%s5303_s20 + $0x70] sm:$0xff]  ;;  %s5291_s27 = smov 40   ;;  %s5315_s24 = smov 40  }
  0x17   :  { %4154 = vmatprep.subr.bf16.mxu1 %v4153_v32  ;;  %v4141_v45 = vpack.c.bf16 %v89_v44, %v88_v43  ;;  %v91_v47 = vld [vmem:[%s5303_s20 + $0x78] sm:$0xff]  ;;  %s4560_s20 = smov 96   ;;  %vm4778_vm12 = vmpackc.low %vm104_vm0, %vm104_vm0  ;;  %v357_v23 = vld [vmem:[%s5273_s4] sm:$0xff] }
  0x18   :  { %v4145_v48 = vpack.c.bf16 %v91_v47, %v90_v46 }
  0x19   :  { %4124 = vmatpush3.bf16.msra.mxu0 %v4121_v25 }
  0x1a   :  { %4126 = vmatprep.subr.bf16.mxu0 %v4125_v33  ;;  %4156 = vmatpush3.bf16.msra.mxu1 %v4153_v32 }
  0x1d   :  { %4128 = vmatpush3.bf16.msra.mxu0 %v4125_v33 }
  0x1e   :  { %4130 = vmatprep.subr.bf16.mxu0 %v4129_v36 }
  0x21   :  { %4132 = vmatpush3.bf16.msra.mxu0 %v4129_v36 }
  0x22   :  { %4134 = vmatprep.subr.bf16.mxu0 %v4133_v39 }
  0x25   :  { %4136 = vmatpush3.bf16.msra.mxu0 %v4133_v39 }
  0x26   :  { %4138 = vmatprep.subr.bf16.mxu0 %v4137_v42 }
  0x29   :  { %4140 = vmatpush3.bf16.msra.mxu0 %v4137_v42 }
  0x2a   :  { %4142 = vmatprep.subr.bf16.mxu0 %v4141_v45 }
  0x2d   :  { %4144 = vmatpush3.bf16.msra.mxu0 %v4141_v45 }
  0x2e   :  { %4146 = vmatprep.subr.bf16.mxu0 %v4145_v48 }
  0x31   :  { %4148 = vmatpush3.bf16.msra.mxu0 %v4145_v48 }
  0x8b   :  { %v66_v49 = vpop.permute.xlu0 %65 }
  0x8c   :  { %vm70_vm9 = vcmp.eq.s32.totalorder %v66_v49, %v4681_v6 }
  0x8d   :  { %3837 = vmatprep.mubr.msk.f32.mxu0 %vm70_vm9, %v4559_v50 }
  0x8f   :  { %v69_v51 = vpop.permute.xlu0 %68 }
  0x90   :  { %vm71_vm10 = vcmp.eq.s32.totalorder %v69_v51, %v4681_v6 }
  0x91   :  { %3838 = vmatmul.mubr.msk.f32.vlgmr.msra.gmra.mrb[0].mxu0 %vm71_vm10, %v4559_v50 }
 0x164   :  { %v4756_v52 = vpop.f32.mrb[0].mxu0 }
 0x165   :  { %v4758_v53 = vpop.f32.mrb[1].mxu0 }
 0x166   :  { %3848 = vmatprep.mubr.msk.f32.mxu1 %vm275_vm11, %v4758_v53 }
 0x167   :  { %3849 = vmatmul.mubr.msk.f32.vlgmr.msra.gmra.mrb[0].mxu1 %vm275_vm11, %v4756_v52 }
 0x23a   :  { %v4764_v54 = vpop.f32.mrb[0].mxu1 }
 0x23b   :  { %v4766_v55 = vpop.f32.mrb[1].mxu1 }
 0x23c   :  { %3855 = vmatprep.mubr.msk.f32.mxu1 %vm104_vm0, %v4766_v55  ;;  %v4772_v56 = vpack.i.bf16 %v4764_v54, %v4766_v55 }
 0x23e   :  { %4370 = vrot.lane.b32.xlu1 %v4772_v56, %s4560_s20 }
 0x2b0   :  { %v4371_v57 = vpop.permute.xlu1 %4370 }
 0x2b1   :  { %v4373_v58 = vunpack.i.h.bf16 %v4371_v57  ;;  %v4372_v59 = vunpack.i.l.bf16 %v4371_v57 }
 0x2b3   :  { %v4157_v61 = vpack.c.bf16 %v4373_v58, %v4372_v59 }
 0x2b5   :  { %4159 = vmatprep.subr.msk.bf16.mxu1 %vm4778_vm12, %v4157_v61 }
 0x2b6   :  { %4162 = vmatpush3.bf16.xpose.msk.msra.mxu1 %vm4778_vm12, %v4157_v61 }
 0x2bd   :  { %3856 = vmatmul.mubr.msk.f32.vlgmr.msra.gmra.mrb[2].mxu1 %vm104_vm0, %v4764_v54 }
 0x390   :  { %v3857_v62 = vpop.f32.mrb[2].mxu1 }
 0x391   :  { %v458_v63 = vmul.f32 0.35355338, %v3857_v62  ;;  %v448_v0 = vpop.f32.mrb[3].mxu1 }
 0x392   :  { %v457_v1 = vmul.f32 0.35355338, %v448_v0 }
 0x393   :  { %v460_v2 = vsel %vm4713_vm8, %v458_v63, -1e+30 }
 0x394   :  { %v465_v3 = vsel %vm461_vm13, %v460_v2, -inf  ;;  %v459_v4 = vsel %vm4706_vm7, %v457_v1, -1e+30 }
 0x395   :  { %466 = vmax.xlane.f32.xlu0 %v465_v3  ;;  %v462_v5 = vsel %vm461_vm13, %v459_v4, -inf }
 0x396   :  { %463 = vmax.xlane.f32.xlu1 %v462_v5 }
 0x422   :  { %v467_v6 = vpop.xlane.xlu0 %466 }
 0x423   :  { %v469_v7 = vsub.f32 %v460_v2, %v467_v6  ;;  %v464_v8 = vpop.xlane.xlu1 %463  ;;  %v358_v6 = vld [vmem:[%s5273_s4 + $0x8] sm:$0xff] }
 0x424   :  { %v468_v9 = vsub.f32 %v459_v4, %v464_v8 }
 0x425   :  { %v472_v10 = vmul.f32 1.442695, %v469_v7 }
 0x426   :  { %v470_v11 = vmul.f32 1.442695, %v468_v9 }
 0x427   :  { %4449 = vpow2.f32 %v472_v10 }
 0x428   :  { %4451 = vpow2.f32 %v470_v11 }
 0x431   :  { %v4450_v12 = vpop.eup %4449 }
 0x432   :  { %v4452_v13 = vpop.eup %4451  ;;  %v477_v14 = vsel %vm461_vm13, %v4450_v12, 0.0 }
 0x433   :  { %478 = vadd.xlane.f32.xlu1 %v477_v14  ;;  %v474_v15 = vsel %vm461_vm13, %v4452_v13, 0.0 }
 0x434   :  { %475 = vadd.xlane.f32.xlu0 %v474_v15 }
 0x444   :  { %4380 = vrot.lane.b32.xlu1 %v4772_v56, %s4561_s29 }
 0x448   :  { %654 = vrot.lane.b32.xlu1 %v4766_v55, %s4562_s30 }
 0x44a   :  { %4375 = vrot.lane.b32.xlu0 %v4772_v56, %s4563_s0 }
 0x44e   :  { %656 = vrot.lane.b32.xlu0 %v4764_v54, %s4562_s30 }
 0x4c0   :  { %v479_v16 = vpop.xlane.xlu1 %478 }
 0x4c1   :  { %4453 = vrcp.f32 %v479_v16  ;;  %v476_v17 = vpop.xlane.xlu0 %475 }
 0x4c2   :  { %4455 = vrcp.f32 %v476_v17 }
 0x4c4   :  { %v4381_v22 = vpop.permute.xlu1 %4380 }
 0x4c5   :  { %v4376_v18 = vpop.permute.xlu0 %4375  ;;  %v4383_v27 = vunpack.i.h.bf16 %v4381_v22  ;;  %v4382_v29 = vunpack.i.l.bf16 %v4381_v22 }
 0x4c6   :  { %v4378_v19 = vunpack.i.h.bf16 %v4376_v18  ;;  %v4377_v20 = vunpack.i.l.bf16 %v4376_v18 }
 0x4c7   :  { %v4167_v32 = vpack.c.bf16 %v4383_v27, %v4382_v29 }
 0x4c8   :  { %v4163_v21 = vpack.c.bf16 %v4378_v19, %v4377_v20  ;;  %v655_v35 = vpop.permute.xlu1 %654 }
 0x4c9   :  { %v657_v36 = vpop.permute.xlu0 %656 }
 0x4ca   :  { %4164 = vmatprep.subr.bf16.mxu1 %v4163_v21 }
 0x4cb   :  { %v4454_v25 = vpop.eup %4453  ;;  %4166 = vmatpush3.bf16.msra.mxu1 %v4163_v21 }
 0x4cc   :  { %v4456_v26 = vpop.eup %4455  ;;  %3865 = vmatprep.subr.mxu1 %v357_v23  ;;  %v483_v31 = vmul.f32 %v4454_v25, %v4450_v12 }
 0x4cd   :  { %v482_v30 = vmul.f32 %v4456_v26, %v4452_v13 }
 0x4cf   :  { %3862 = vmatprep.mubr.msk.f32.mxu1 %vm461_vm13, %v482_v30 }
 0x4d0   :  { %3863 = vmatmul.mubr.msk.f32.vlgmr.msra.gmra.mrb[4].mxu1 %vm461_vm13, %v483_v31 }
 0x4d1   :  { %3866 = vmatpush3.msra.mxu1 %v357_v23 }
 0x4d2   :  { %4169 = vmatprep.subr.msk.bf16.mxu1 %vm4778_vm12, %v4167_v32 }
 0x5a3   :  { %v3864_v33 = vpop.f32.mrb[4].mxu1 }
 0x5a4   :  { %v562_v34 = vpop.f32.mrb[5].mxu1 }
 0x5a5   :  { %3867 = vmatprep.mubr.msk.f32.mxu1 %vm104_vm0, %v562_v34 }
 0x5a6   :  { %3868 = vmatmul.mubr.msk.f32.vlgmr.msra.gmra.mrb[6].mxu1 %vm104_vm0, %v3864_v33 }
 0x5a7   :  { %4172 = vmatpush3.bf16.xpose.msk.msra.mxu1 %vm4778_vm12, %v4167_v32  ;;  %3874 = vmatprep.mubr.msk.f32.mxu1 %vm104_vm0, %v655_v35 }
 0x5ae   :  { %3875 = vmatmul.mubr.msk.f32.vlgmr.msra.gmra.mrb[8].mxu1 %vm104_vm0, %v657_v36 }
 0x681   :  { %v3876_v37 = vpop.f32.mrb[8].mxu1 }
 0x682   :  { %v746_v38 = vmul.f32 0.35355338, %v3876_v37  ;;  %v736_v39 = vpop.f32.mrb[9].mxu1 }
 0x683   :  { %v745_v40 = vmul.f32 0.35355338, %v736_v39 }
 0x684   :  { %v748_v41 = vsel %vm4713_vm8, %v746_v38, -1e+30 }
 0x685   :  { %v752_v42 = vsel %vm461_vm13, %v748_v41, -inf  ;;  %v747_v43 = vsel %vm4706_vm7, %v745_v40, -1e+30 }
 0x686   :  { %753 = vmax.xlane.f32.xlu0 %v752_v42  ;;  %v749_v44 = vsel %vm461_vm13, %v747_v43, -inf }
 0x687   :  { %750 = vmax.xlane.f32.xlu1 %v749_v44 }
 0x713   :  { %v754_v45 = vpop.xlane.xlu0 %753 }
 0x714   :  { %v756_v46 = vsub.f32 %v748_v41, %v754_v45  ;;  %v751_v47 = vpop.xlane.xlu1 %750 }
 0x715   :  { %v755_v48 = vsub.f32 %v747_v43, %v751_v47 }
 0x716   :  { %v759_v49 = vmul.f32 1.442695, %v756_v46 }
 0x717   :  { %v757_v50 = vmul.f32 1.442695, %v755_v48 }
 0x718   :  { %4457 = vpow2.f32 %v759_v49 }
 0x719   :  { %4459 = vpow2.f32 %v757_v50 }
 0x722   :  { %v4458_v51 = vpop.eup %4457 }
 0x723   :  { %v4460_v57 = vpop.eup %4459  ;;  %v764_v58 = vsel %vm461_vm13, %v4458_v51, 0.0 }
 0x724   :  { %765 = vadd.xlane.f32.xlu1 %v764_v58  ;;  %v761_v59 = vsel %vm461_vm13, %v4460_v57, 0.0 }
 0x725   :  { %762 = vadd.xlane.f32.xlu0 %v761_v59 }
 0x735   :  { %4390 = vrot.lane.b32.xlu1 %v4772_v56, %s5296_s21 }
 0x739   :  { %941 = vrot.lane.b32.xlu1 %v4766_v55, %s4565_s22 }
 0x73b   :  { %4385 = vrot.lane.b32.xlu0 %v4772_v56, %s4566_s2 }
 0x73d   :  { %4395 = vrot.lane.b32.xlu1 %v4772_v56, %s5295_s13  ;;  %s5314_s13 = smov 48  }
 0x73f   :  { %943 = vrot.lane.b32.xlu0 %v4764_v54, %s4565_s22 }
 0x741   :  { %1230 = vrot.lane.b32.xlu1 %v4764_v54, %s5293_s23 }
 0x743   :  { %1228 = vrot.lane.b32.xlu0 %v4766_v55, %s5293_s23 }
 0x7b1   :  { %v766_v61 = vpop.xlane.xlu1 %765 }
 0x7b2   :  { %4461 = vrcp.f32 %v766_v61  ;;  %v763_v62 = vpop.xlane.xlu0 %762 }
 0x7b3   :  { %4463 = vrcp.f32 %v763_v62 }
 0x7b5   :  { %v4391_v63 = vpop.permute.xlu1 %4390 }
 0x7b6   :  { %v4386_v0 = vpop.permute.xlu0 %4385  ;;  %v4393_v55 = vunpack.i.h.bf16 %v4391_v63  ;;  %v4392_v8 = vunpack.i.l.bf16 %v4391_v63 }
 0x7b7   :  { %v4388_v1 = vunpack.i.h.bf16 %v4386_v0  ;;  %v4387_v2 = vunpack.i.l.bf16 %v4386_v0 }
 0x7b8   :  { %v4177_v16 = vpack.c.bf16 %v4393_v55, %v4392_v8 }
 0x7b9   :  { %v4173_v3 = vpack.c.bf16 %v4388_v1, %v4387_v2  ;;  %v942_v4 = vpop.permute.xlu1 %941 }
 0x7ba   :  { %v944_v5 = vpop.permute.xlu0 %943 }
 0x7bb   :  { %4174 = vmatprep.subr.bf16.mxu1 %v4173_v3 }
 0x7bc   :  { %v4462_v54 = vpop.eup %4461  ;;  %4176 = vmatpush3.bf16.msra.mxu1 %v4173_v3 }
 0x7bd   :  { %v4464_v7 = vpop.eup %4463  ;;  %v4396_v9 = vpop.permute.xlu1 %4395  ;;  %3884 = vmatprep.subr.mxu1 %v358_v6  ;;  %v770_v14 = vmul.f32 %v4462_v54, %v4458_v51  ;;  %v359_v51 = vld [vmem:[%s5273_s4 + $0x10] sm:$0xff] }
 0x7be   :  { %v4398_v10 = vunpack.i.h.bf16 %v4396_v9  ;;  %v4397_v11 = vunpack.i.l.bf16 %v4396_v9  ;;  %v1229_v12 = vpop.permute.xlu0 %1228  ;;  %v769_v13 = vmul.f32 %v4464_v7, %v4460_v57 }
 0x7bf   :  { %3912 = vmatprep.mubr.msk.f32.mxu0 %vm104_vm0, %v1229_v12 }
 0x7c0   :  { %v4187_v15 = vpack.c.bf16 %v4398_v10, %v4397_v11  ;;  %3881 = vmatprep.mubr.msk.f32.mxu1 %vm461_vm13, %v769_v13 }
 0x7c1   :  { %3882 = vmatmul.mubr.msk.f32.vlgmr.msra.gmra.mrb[10].mxu1 %vm461_vm13, %v770_v14  ;;  %v1231_v17 = vpop.permute.xlu1 %1230 }
 0x7c2   :  { %3885 = vmatpush3.msra.mxu1 %v358_v6  ;;  %4189 = vmatprep.subr.msk.bf16.mxu0 %vm4778_vm12, %v4187_v15 }
 0x7c3   :  { %4179 = vmatprep.subr.msk.bf16.mxu1 %vm4778_vm12, %v4177_v16  ;;  %4192 = vmatpush3.bf16.xpose.msk.msra.mxu0 %vm4778_vm12, %v4187_v15 }
 0x7ca   :  { %3913 = vmatmul.mubr.msk.f32.vlgmr.msra.gmra.mrb[2].mxu0 %vm104_vm0, %v1231_v17 }
 0x894   :  { %v3883_v18 = vpop.f32.mrb[10].mxu1 }
 0x895   :  { %v849_v19 = vpop.f32.mrb[11].mxu1 }
 0x896   :  { %3886 = vmatprep.mubr.msk.f32.mxu1 %vm104_vm0, %v849_v19  ;;  %v360_v19 = vld [vmem:[%s5273_s4 + $0x18] sm:$0xff] }
 0x897   :  { %3887 = vmatmul.mubr.msk.f32.vlgmr.msra.gmra.mrb[6].mxu1 %vm104_vm0, %v3883_v18 }
 0x898   :  { %4182 = vmatpush3.bf16.xpose.msk.msra.mxu1 %vm4778_vm12, %v4177_v16  ;;  %3893 = vmatprep.mubr.msk.f32.mxu1 %vm104_vm0, %v942_v4 }
 0x89d   :  { %v3914_v20 = vpop.f32.mrb[2].mxu0 }
 0x89e   :  { %v1310_v21 = vpop.f32.mrb[3].mxu0  ;;  %v1320_v46 = vmul.f32 0.35355338, %v3914_v20 }
 0x89f   :  { %3894 = vmatmul.mubr.msk.f32.vlgmr.msra.gmra.mrb[12].mxu1 %vm104_vm0, %v944_v5  ;;  %v1319_v45 = vmul.f32 0.35355338, %v1310_v21 }
 0x8a0   :  { %v1322_v49 = vsel %vm4713_vm8, %v1320_v46, -1e+30 }
 0x8a1   :  { %v1321_v47 = vsel %vm4706_vm7, %v1319_v45, -1e+30  ;;  %v1326_v50 = vsel %vm461_vm13, %v1322_v49, -inf  ;;  %v1564_v45 = vld [vmem:[%s5277_s8 + $0x10] sm:$0xff] }
 0x8a2   :  { %v1323_v48 = vsel %vm461_vm13, %v1321_v47, -inf }
 0x972   :  { %v3895_v22 = vpop.f32.mrb[12].mxu1 }
 0x973   :  { %v1033_v23 = vmul.f32 0.35355338, %v3895_v22  ;;  %v1023_v25 = vpop.f32.mrb[13].mxu1 }
 0x974   :  { %v1032_v26 = vmul.f32 0.35355338, %v1023_v25 }
 0x975   :  { %v1035_v27 = vsel %vm4713_vm8, %v1033_v23, -1e+30  ;;  %v3501_v23 = vld [vmem:[%s5274_s5] ss:$0 sm:$0xff] }
 0x976   :  { %v1039_v29 = vsel %vm461_vm13, %v1035_v27, -inf  ;;  %v1034_v30 = vsel %vm4706_vm7, %v1032_v26, -1e+30 }
 0x977   :  { %1040 = vmax.xlane.f32.xlu1 %v1039_v29  ;;  %v1036_v31 = vsel %vm461_vm13, %v1034_v30, -inf }
 0x978   :  { %1037 = vmax.xlane.f32.xlu0 %v1036_v31 }
 0x988   :  { %4400 = vrot.lane.b32.xlu1 %v4772_v56, %s5292_s26 }
 0x98c   :  { %4405 = vrot.lane.b32.xlu1 %v4772_v56, %s5291_s27 }
 0xa04   :  { %v1041_v32 = vpop.xlane.xlu1 %1040 }
 0xa05   :  { %v1043_v33 = vsub.f32 %v1035_v27, %v1041_v32  ;;  %v1038_v34 = vpop.xlane.xlu0 %1037 }
 0xa06   :  { %v1042_v35 = vsub.f32 %v1034_v30, %v1038_v34 }
 0xa07   :  { %v1046_v36 = vmul.f32 1.442695, %v1043_v33 }
 0xa08   :  { %v1044_v37 = vmul.f32 1.442695, %v1042_v35  ;;  %v4401_v38 = vpop.permute.xlu1 %4400 }
 0xa09   :  { %v4403_v39 = vunpack.i.h.bf16 %v4401_v38  ;;  %v4402_v40 = vunpack.i.l.bf16 %v4401_v38 }
 0xa0a   :  { %4465 = vpow2.f32 %v1044_v37 }
 0xa0b   :  { %v4183_v41 = vpack.c.bf16 %v4403_v39, %v4402_v40  ;;  %4467 = vpow2.f32 %v1046_v36 }
 0xa0c   :  { %v4406_v63 = vpop.permute.xlu1 %4405 }
 0xa0d   :  { %4184 = vmatprep.subr.bf16.mxu1 %v4183_v41  ;;  %v4408_v4 = vunpack.i.h.bf16 %v4406_v63  ;;  %v4407_v5 = vunpack.i.l.bf16 %v4406_v63  ;;  %v1663_v63 = vld [vmem:[%s5279_s10 + $0x38] sm:$0xff] }
 0xa0e   :  { %4186 = vmatpush3.bf16.msra.mxu1 %v4183_v41 }
 0xa0f   :  { %3903 = vmatprep.subr.mxu1 %v359_v51  ;;  %v4193_v55 = vpack.c.bf16 %v4408_v4, %v4407_v5  ;;  %v1666_v4 = vld [vmem:[%s5279_s10 + $0x50] sm:$0xff]  ;;  %v1667_v5 = vld [vmem:[%s5279_s10 + $0x58] sm:$0xff] }
 0xa14   :  { %v4466_v42 = vpop.eup %4465 }
 0xa15   :  { %v1048_v43 = vsel %vm461_vm13, %v4466_v42, 0.0  ;;  %v4468_v44 = vpop.eup %4467 }
 0xa16   :  { %1049 = vadd.xlane.f32.xlu0 %v1048_v43  ;;  %v1051_v56 = vsel %vm461_vm13, %v4468_v44, 0.0  ;;  %v1563_v43 = vld [vmem:[%s5277_s8 + $0x8] sm:$0xff] }
 0xa1a   :  { %1052 = vadd.xlane.f32.xlu0 %v1051_v56  ;;  %v1565_v56 = vld [vmem:[%s5277_s8 + $0x18] sm:$0xff] }
 0xa1b   :  { %v4201_v46 = vpack.c.bf16 %v1565_v56, %v1564_v45 }
 0xa1e   :  { %1324 = vmax.xlane.f32.xlu0 %v1323_v48  ;;  %v1657_v48 = vld [vmem:[%s5279_s10 + $0x8] sm:$0xff] }
 0xa22   :  { %1327 = vmax.xlane.f32.xlu0 %v1326_v50 }
 0xaa3   :  { %v1050_v57 = vpop.xlane.xlu0 %1049 }
 0xaa4   :  { %4469 = vrcp.f32 %v1050_v57 }
 0xaa7   :  { %v1053_v58 = vpop.xlane.xlu0 %1052 }
 0xaa8   :  { %4471 = vrcp.f32 %v1053_v58  ;;  %v1660_v58 = vld [vmem:[%s5279_s10 + $0x20] sm:$0xff] }
 0xaab   :  { %v1325_v59 = vpop.xlane.xlu0 %1324 }
 0xaac   :  { %v1329_v61 = vsub.f32 %v1321_v47, %v1325_v59  ;;  %v1656_v47 = vld [vmem:[%s5279_s10] sm:$0xff]  ;;  %v1661_v59 = vld [vmem:[%s5279_s10 + $0x28] sm:$0xff] }
 0xaad   :  { %v4205_v50 = vpack.c.bf16 %v1657_v48, %v1656_v47 }
 0xaae   :  { %v4470_v62 = vpop.eup %4469  ;;  %v1331_v0 = vmul.f32 1.442695, %v1329_v61  ;;  %v4213_v61 = vpack.c.bf16 %v1661_v59, %v1660_v58  ;;  %v3543_v58 = vld [vmem:[%s5272_s3 + $0x28] sm:$0xff] }
 0xaaf   :  { %v1328_v1 = vpop.xlane.xlu0 %1327  ;;  %v1056_v2 = vmul.f32 %v4470_v62, %v4466_v42  ;;  %v1562_v42 = vld [vmem:[%s5277_s8] sm:$0xff]  ;;  %v1662_v62 = vld [vmem:[%s5279_s10 + $0x30] sm:$0xff] }
 0xab0   :  { %4473 = vpow2.f32 %v1331_v0  ;;  %v1330_v3 = vsub.f32 %v1322_v49, %v1328_v1  ;;  %v1658_v49 = vld [vmem:[%s5279_s10 + $0x10] sm:$0xff]  ;;  %v4217_v0 = vpack.c.bf16 %v1663_v63, %v1662_v62  ;;  %v1664_v1 = vld [vmem:[%s5279_s10 + $0x40] sm:$0xff]  ;;  %v3545_v62 = vld [vmem:[%s5272_s3 + $0x38] sm:$0xff] }
 0xab1   :  { %3900 = vmatprep.mubr.msk.f32.mxu1 %vm461_vm13, %v1056_v2  ;;  %v1665_v2 = vld [vmem:[%s5279_s10 + $0x48] sm:$0xff] }
 0xab2   :  { %v4472_v6 = vpop.eup %4471  ;;  %v1333_v54 = vmul.f32 1.442695, %v1330_v3  ;;  %v4221_v3 = vpack.c.bf16 %v1665_v2, %v1664_v1 }
 0xab3   :  { %v1057_v7 = vmul.f32 %v4472_v6, %v4468_v44  ;;  %v4197_v44 = vpack.c.bf16 %v1563_v43, %v1562_v42  ;;  %v4225_v6 = vpack.c.bf16 %v1667_v5, %v1666_v4 }
 0xab4   :  { %4475 = vpow2.f32 %v1333_v54  ;;  %v1668_v54 = vld [vmem:[%s5279_s10 + $0x60] sm:$0xff] }
 0xab5   :  { %3901 = vmatmul.mubr.msk.f32.vlgmr.msra.gmra.mrb[14].mxu1 %vm461_vm13, %v1057_v7  ;;  %4198 = vmatprep.subr.bf16.mxu0 %v4197_v44  ;;  %v1669_v7 = vld [vmem:[%s5279_s10 + $0x68] sm:$0xff] }
 0xab6   :  { %3904 = vmatpush3.msra.mxu1 %v359_v51  ;;  %4200 = vmatpush3.bf16.msra.mxu0 %v4197_v44  ;;  %v1659_v51 = vld [vmem:[%s5279_s10 + $0x18] sm:$0xff] }
 0xab7   :  { %4194 = vmatprep.subr.bf16.mxu1 %v4193_v55  ;;  %4202 = vmatprep.subr.bf16.mxu0 %v4201_v46  ;;  %v4209_v57 = vpack.c.bf16 %v1659_v51, %v1658_v49 }
 0xaba   :  { %v4474_v8 = vpop.eup %4473  ;;  %4204 = vmatpush3.bf16.msra.mxu0 %v4201_v46 }
 0xabb   :  { %v1335_v9 = vsel %vm461_vm13, %v4474_v8, 0.0 }
 0xabc   :  { %1336 = vadd.xlane.f32.xlu0 %v1335_v9 }
 0xabe   :  { %v4476_v10 = vpop.eup %4475 }
 0xabf   :  { %v1338_v11 = vsel %vm461_vm13, %v4476_v10, 0.0 }
 0xac0   :  { %1339 = vadd.xlane.f32.xlu0 %v1338_v11 }
 0xb49   :  { %v1337_v12 = vpop.xlane.xlu0 %1336 }
 0xb4a   :  { %4477 = vrcp.f32 %v1337_v12 }
 0xb4d   :  { %v1340_v13 = vpop.xlane.xlu0 %1339 }
 0xb4e   :  { %4479 = vrcp.f32 %v1340_v13 }
 0xb54   :  { %v4478_v14 = vpop.eup %4477 }
 0xb55   :  { %v1343_v18 = vmul.f32 %v4478_v14, %v4474_v8 }
 0xb58   :  { %v4480_v17 = vpop.eup %4479 }
 0xb59   :  { %v1344_v20 = vmul.f32 %v4480_v17, %v4476_v10  ;;  %v3535_v17 = vld [vmem:[%s5276_s7] ss:$0 sm:$0xff] }
 0xb88   :  { %v3902_v15 = vpop.f32.mrb[14].mxu1 }
 0xb89   :  { %v1136_v16 = vpop.f32.mrb[15].mxu1 }
 0xb8a   :  { %3905 = vmatprep.mubr.msk.f32.mxu1 %vm104_vm0, %v1136_v16 }
 0xb8b   :  { %3906 = vmatmul.mubr.msk.f32.vlgmr.msra.gmra.mrb[6].mxu1 %vm104_vm0, %v3902_v15  ;;  %v3534_v15 = vld [vmem:[%s5275_s6] ss:$0 sm:$0xff] }
 0xb8c   :  { %4196 = vmatpush3.bf16.msra.mxu1 %v4193_v55  ;;  %3919 = vmatprep.mubr.msk.f32.mxu1 %vm461_vm13, %v1343_v18  ;;  %v4229_v55 = vpack.c.bf16 %v1669_v7, %v1668_v54  ;;  %v3540_v54 = vld [vmem:[%s5281_s12] ss:$0 sm:$0xff] }
 0xb8d   :  { %3922 = vmatprep.subr.mxu1 %v360_v19 }
 0xb8f   :  { %3920 = vmatmul.mubr.msk.f32.vlgmr.msra.gmra.mrb[16].mxu1 %vm461_vm13, %v1344_v20 }
 0xb90   :  { %3923 = vmatpush3.msra.mxu1 %v360_v19 }
 0xb91   :  { %4206 = vmatprep.subr.bf16.mxu1 %v4205_v50 }
 0xc62   :  { %v3921_v21 = vpop.f32.mrb[16].mxu1 }
 0xc63   :  { %v1423_v22 = vpop.f32.mrb[17].mxu1 }
 0xc64   :  { %3924 = vmatprep.mubr.msk.f32.mxu1 %vm104_vm0, %v1423_v22 }
 0xc65   :  { %3925 = vmatmul.mubr.msk.f32.vlgmr.msra.gmra.mrb[6].mxu1 %vm104_vm0, %v3921_v21 }
 0xc66   :  { %4208 = vmatpush3.bf16.msra.mxu1 %v4205_v50 }
 0xc67   :  { %4210 = vmatprep.subr.bf16.mxu1 %v4209_v57 }
 0xc6a   :  { %4212 = vmatpush3.bf16.msra.mxu1 %v4209_v57  ;;  %v3542_v57 = vld [vmem:[%s5272_s3 + $0x20] sm:$0xff] }
 0xc6b   :  { %4214 = vmatprep.subr.bf16.mxu1 %v4213_v61  ;;  %v4237_v59 = vpack.c.bf16 %v3543_v58, %v3542_v57 }
 0xc6d   :  { %4238 = vmatprep.subr.bf16.mxu0 %v4237_v59 }
 0xc6e   :  { %4216 = vmatpush3.bf16.msra.mxu1 %v4213_v61  ;;  %v3544_v61 = vld [vmem:[%s5272_s3 + $0x30] sm:$0xff]  ;;  %s5310_s3 = sld [smem:[#allocation8_spill]] }
 0xc6f   :  { %4218 = vmatprep.subr.bf16.mxu1 %v4217_v0  ;;  %v4241_v63 = vpack.c.bf16 %v3545_v62, %v3544_v61 }
 0xc72   :  { %4220 = vmatpush3.bf16.msra.mxu1 %v4217_v0 }
 0xc73   :  { %4222 = vmatprep.subr.bf16.mxu1 %v4221_v3 }
 0xc76   :  { %4224 = vmatpush3.bf16.msra.mxu1 %v4221_v3 }
 0xc77   :  { %4226 = vmatprep.subr.bf16.mxu1 %v4225_v6 }
 0xc7a   :  { %4228 = vmatpush3.bf16.msra.mxu1 %v4225_v6 }
 0xc7b   :  { %4230 = vmatprep.subr.bf16.mxu1 %v4229_v55 }
 0xc7e   :  { %4232 = vmatpush3.bf16.msra.mxu1 %v4229_v55  ;;  %v3541_v55 = vld [vmem:[%s5310_s3] ss:$0 sm:$0xff] }
 0xd38   :  { %v3926_v25 = vpop.f32.mrb[6].mxu1 }
 0xd39   :  { %v4333_v26 = vadd.f32 %v3926_v25, %v3501_v23  ;;  %v1504_v27 = vpop.f32.mrb[7].mxu1  ;;  %v1670_v25 = vld [vmem:[%s5279_s10 + $0x70] sm:$0xff] }
 0xd3a   :  { %v4334_v29 = vadd.f32 %v3501_v23, %v1504_v27 }
 0xd3b   :  { %v1516_v30 = vadd.f32 %v4333_v26, %v4756_v52  ;;  %v1671_v26 = vld [vmem:[%s5279_s10 + $0x78] sm:$0xff] }
 0xd3c   :  { %v1515_v31 = vadd.f32 %v4334_v29, %v4758_v53  ;;  %v4233_v27 = vpack.c.bf16 %v1671_v26, %v1670_v25  ;;  %v3536_v29 = vld [vmem:[%s5278_s9] ss:$0 sm:$0xff] }
 0xd3d   :  { %v1522_v32 = vsel %vm275_vm11, %v1516_v30, 0.0 }
 0xd3e   :  { %1523 = vadd.xlane.f32.xlu1 %v1522_v32  ;;  %v1519_v33 = vsel %vm275_vm11, %v1515_v31, 0.0  ;;  %4234 = vmatprep.subr.bf16.mxu1 %v4233_v27 }
 0xd3f   :  { %1520 = vadd.xlane.f32.xlu0 %v1519_v33  ;;  %4236 = vmatpush3.bf16.msra.mxu1 %v4233_v27 }
 0xdcb   :  { %v1524_v34 = vpop.xlane.xlu1 %1523 }
 0xdcc   :  { %v1527_v35 = vmul.f32 0.03125, %v1524_v34  ;;  %v1521_v36 = vpop.xlane.xlu0 %1520 }
 0xdcd   :  { %v1526_v37 = vmul.f32 0.03125, %v1521_v36  ;;  %v3539_v36 = vld [vmem:[%s5280_s11] ss:$0 sm:$0xff] }
 0xdce   :  { %v4899_v38 = vsub.f32 %v1516_v30, %v1527_v35 }
 0xdcf   :  { %v1528_v39 = vsub.f32 %v1515_v31, %v1526_v37 }
 0xdd0   :  { %v1531_v52 = vmul.f32 %v4899_v38, %v4899_v38 }
 0xdd1   :  { %v1530_v40 = vmul.f32 %v1528_v39, %v1528_v39 }
 0xdd2   :  { %v1535_v53 = vsel %vm275_vm11, %v1531_v52, 0.0 }
 0xdd3   :  { %v1532_v41 = vsel %vm275_vm11, %v1530_v40, 0.0 }
 0xdd4   :  { %1533 = vadd.xlane.f32.xlu0 %v1532_v41 }
 0xdd8   :  { %1536 = vadd.xlane.f32.xlu0 %v1535_v53 }
 0xe61   :  { %v1534_v8 = vpop.xlane.xlu0 %1533 }
 0xe62   :  { %v1538_v9 = vmul.f32 0.03125, %v1534_v8 }
 0xe64   :  { %v1540_v10 = vadd.f32 1e-05, %v1538_v9 }
 0xe65   :  { %v1537_v11 = vpop.xlane.xlu0 %1536 }
 0xe66   :  { %4481 = vrsqrt.f32 %v1540_v10  ;;  %v1539_v12 = vmul.f32 0.03125, %v1537_v11 }
 0xe68   :  { %v1541_v13 = vadd.f32 1e-05, %v1539_v12 }
 0xe6a   :  { %4483 = vrsqrt.f32 %v1541_v13 }
 0xe70   :  { %v4482_v14 = vpop.eup %4481 }
 0xe71   :  { %v1544_v16 = vmul.f32 %v4482_v14, %v1528_v39 }
 0xe73   :  { %v1552_v18 = vmul.f32 %v3534_v15, %v1544_v16 }
 0xe74   :  { %v4484_v19 = vpop.eup %4483 }
 0xe75   :  { %v1545_v20 = vmul.f32 %v4484_v19, %v4899_v38  ;;  %v1560_v21 = vadd.f32 %v3535_v17, %v1552_v18 }
 0xe77   :  { %v1553_v22 = vmul.f32 %v3534_v15, %v1545_v20  ;;  %3935 = vmatprep.mubr.msk.f32.mxu0 %vm275_vm11, %v1560_v21 }
 0xe79   :  { %v1561_v23 = vadd.f32 %v3535_v17, %v1553_v22 }
 0xe7b   :  { %3936 = vmatmul.mubr.msk.f32.vlgmr.msra.gmra.mrb[4].mxu0 %vm275_vm11, %v1561_v23 }
 0xe7c   :  { %4240 = vmatpush3.bf16.msra.mxu0 %v4237_v59 }
 0xe7d   :  { %4242 = vmatprep.subr.bf16.mxu0 %v4241_v63 }
 0xe80   :  { %4244 = vmatpush3.bf16.msra.mxu0 %v4241_v63 }
 0xf4e   :  { %v3937_v30 = vpop.f32.mrb[4].mxu0 }
 0xf4f   :  { %v1651_v31 = vadd.f32 %v3937_v30, %v3536_v29  ;;  %v1645_v32 = vpop.f32.mrb[5].mxu0 }
 0xf50   :  { %v1646_v33 = vadd.f32 %v3536_v29, %v1645_v32 }
 0xf51   :  { %v1655_v35 = vmax.f32 %v1651_v31, 0.0 }
 0xf52   :  { %v1654_v34 = vmax.f32 %v1646_v33, 0.0 }
 0xf54   :  { %3970 = vmatprep.mubr.f32.mxu1 %v1654_v34 }
 0xf55   :  { %3971 = vmatmul.mubr.f32.vlgmr.msra.gmra.mrb[18].mxu1 %v1655_v35 }
0x1028   :  { %v3972_v37 = vpop.f32.mrb[18].mxu1 }
0x1029   :  { %v1745_v38 = vpop.f32.mrb[19].mxu1  ;;  %v1751_v39 = vadd.f32 %v3972_v37, %v3539_v36 }
0x102a   :  { %v1746_v40 = vadd.f32 %v3539_v36, %v1745_v38 }
0x102b   :  { %v1755_v53 = vadd.f32 %v1751_v39, %v1561_v23 }
0x102c   :  { %v1754_v41 = vadd.f32 %v1746_v40, %v1560_v21 }
0x102d   :  { %v1761_v42 = vsel %vm275_vm11, %v1755_v53, 0.0 }
0x102e   :  { %v1758_v52 = vsel %vm275_vm11, %v1754_v41, 0.0 }
0x102f   :  { %1759 = vadd.xlane.f32.xlu0 %v1758_v52 }
0x1033   :  { %1762 = vadd.xlane.f32.xlu0 %v1761_v42 }
0x10bc   :  { %v1760_v43 = vpop.xlane.xlu0 %1759 }
0x10bd   :  { %v1764_v44 = vmul.f32 0.03125, %v1760_v43 }
0x10bf   :  { %v1766_v45 = vsub.f32 %v1754_v41, %v1764_v44 }
0x10c0   :  { %v1763_v56 = vpop.xlane.xlu0 %1762 }
0x10c1   :  { %v1765_v46 = vmul.f32 0.03125, %v1763_v56  ;;  %v1768_v47 = vmul.f32 %v1766_v45, %v1766_v45 }
0x10c3   :  { %v1767_v48 = vsub.f32 %v1755_v53, %v1765_v46  ;;  %v1770_v49 = vsel %vm275_vm11, %v1768_v47, 0.0 }
0x10c4   :  { %1771 = vadd.xlane.f32.xlu0 %v1770_v49 }
0x10c5   :  { %v1769_v50 = vmul.f32 %v1767_v48, %v1767_v48 }
0x10c7   :  { %v1773_v51 = vsel %vm275_vm11, %v1769_v50, 0.0 }
0x10c8   :  { %1774 = vadd.xlane.f32.xlu0 %v1773_v51 }
0x1151   :  { %v1772_v0 = vpop.xlane.xlu0 %1771 }
0x1152   :  { %v1776_v1 = vmul.f32 0.03125, %v1772_v0 }
0x1154   :  { %v1778_v2 = vadd.f32 1e-05, %v1776_v1 }
0x1155   :  { %v1775_v3 = vpop.xlane.xlu0 %1774 }
0x1156   :  { %4485 = vrsqrt.f32 %v1778_v2  ;;  %v1777_v4 = vmul.f32 0.03125, %v1775_v3 }
0x1158   :  { %v1779_v5 = vadd.f32 1e-05, %v1777_v4 }
0x115a   :  { %4487 = vrsqrt.f32 %v1779_v5 }
0x1160   :  { %v4486_v6 = vpop.eup %4485 }
0x1161   :  { %v1782_v7 = vmul.f32 %v4486_v6, %v1766_v45  ;;  %v3548_v45 = vld [vmem:[%s5273_s4 + $0x20] sm:$0xff] }
0x1163   :  { %v1790_v8 = vmul.f32 %v3540_v54, %v1782_v7 }
0x1164   :  { %v4488_v9 = vpop.eup %4487 }
0x1165   :  { %v1783_v10 = vmul.f32 %v4488_v9, %v1767_v48  ;;  %v5002_v11 = vadd.f32 %v3541_v55, %v1790_v8 }
0x1167   :  { %v1791_v12 = vmul.f32 %v3540_v54, %v1783_v10  ;;  %3981 = vmatprep.mubr.msk.f32.mxu0 %vm275_vm11, %v5002_v11 }
0x1169   :  { %v5006_v13 = vadd.f32 %v3541_v55, %v1791_v12 }
0x116b   :  { %3982 = vmatmul.mubr.msk.f32.vlgmr.msra.gmra.mrb[6].mxu0 %vm275_vm11, %v5006_v13 }
0x123e   :  { %v5010_v14 = vpop.f32.mrb[6].mxu0 }
0x123f   :  { %v5012_v15 = vpop.f32.mrb[7].mxu0 }
0x1240   :  { %3988 = vmatprep.mubr.msk.f32.mxu0 %vm104_vm0, %v5012_v15  ;;  %v5018_v16 = vpack.i.bf16 %v5010_v14, %v5012_v15 }
0x1242   :  { %4410 = vrot.lane.b32.xlu0 %v5018_v16, %s4560_s20 }
0x12b4   :  { %v4411_v17 = vpop.permute.xlu0 %4410 }
0x12b5   :  { %v4413_v18 = vunpack.i.h.bf16 %v4411_v17  ;;  %v4412_v19 = vunpack.i.l.bf16 %v4411_v17 }
0x12b7   :  { %v4245_v20 = vpack.c.bf16 %v4413_v18, %v4412_v19 }
0x12b9   :  { %4247 = vmatprep.subr.msk.bf16.mxu0 %vm4778_vm12, %v4245_v20 }
0x12ba   :  { %4250 = vmatpush3.bf16.xpose.msk.msra.mxu0 %vm4778_vm12, %v4245_v20 }
0x12c1   :  { %3989 = vmatmul.mubr.msk.f32.vlgmr.msra.gmra.mrb[8].mxu0 %vm104_vm0, %v5010_v14 }
0x1394   :  { %v3990_v21 = vpop.f32.mrb[8].mxu0 }
0x1395   :  { %v1979_v22 = vpop.f32.mrb[9].mxu0  ;;  %v1989_v23 = vmul.f32 0.35355338, %v3990_v21 }
0x1396   :  { %v1988_v25 = vmul.f32 0.35355338, %v1979_v22 }
0x1397   :  { %v1991_v29 = vsel %vm4713_vm8, %v1989_v23, -1e+30 }
0x1398   :  { %v1990_v26 = vsel %vm4706_vm7, %v1988_v25, -1e+30  ;;  %v1995_v30 = vsel %vm461_vm13, %v1991_v29, -inf }
0x1399   :  { %v1992_v27 = vsel %vm461_vm13, %v1990_v26, -inf }
0x139a   :  { %1993 = vmax.xlane.f32.xlu1 %v1992_v27 }
0x139e   :  { %1996 = vmax.xlane.f32.xlu1 %v1995_v30 }
0x1427   :  { %v1994_v31 = vpop.xlane.xlu1 %1993 }
0x1428   :  { %v1998_v32 = vsub.f32 %v1990_v26, %v1994_v31 }
0x142a   :  { %v2000_v33 = vmul.f32 1.442695, %v1998_v32 }
0x142b   :  { %v1997_v34 = vpop.xlane.xlu1 %1996 }
0x142c   :  { %4489 = vpow2.f32 %v2000_v33  ;;  %v1999_v35 = vsub.f32 %v1991_v29, %v1997_v34 }
0x142e   :  { %v2002_v36 = vmul.f32 1.442695, %v1999_v35 }
0x1430   :  { %4491 = vpow2.f32 %v2002_v36 }
0x1436   :  { %v4490_v37 = vpop.eup %4489 }
0x1437   :  { %v2004_v38 = vsel %vm461_vm13, %v4490_v37, 0.0 }
0x1438   :  { %2005 = vadd.xlane.f32.xlu1 %v2004_v38 }
0x143a   :  { %v4492_v39 = vpop.eup %4491 }
0x143b   :  { %v2007_v40 = vsel %vm461_vm13, %v4492_v39, 0.0 }
0x143c   :  { %2008 = vadd.xlane.f32.xlu0 %v2007_v40 }
0x1449   :  { %4415 = vrot.lane.b32.xlu1 %v5018_v16, %s4563_s0  ;;  %s5313_s0 = smov 104  }
0x144d   :  { %4420 = vrot.lane.b32.xlu1 %v5018_v16, %s4561_s29  ;;  %s5311_s29 = smov 80  }
0x1451   :  { %2184 = vrot.lane.b32.xlu1 %v5012_v15, %s4562_s30 }
0x1455   :  { %2186 = vrot.lane.b32.xlu1 %v5010_v14, %s4562_s30  ;;  %s5312_s30 = smov 72  }
0x14c5   :  { %v2006_v41 = vpop.xlane.xlu1 %2005 }
0x14c6   :  { %4493 = vrcp.f32 %v2006_v41 }
0x14c9   :  { %v2009_v52 = vpop.xlane.xlu0 %2008  ;;  %v4416_v53 = vpop.permute.xlu1 %4415 }
0x14ca   :  { %4495 = vrcp.f32 %v2009_v52  ;;  %v4418_v42 = vunpack.i.h.bf16 %v4416_v53  ;;  %v4417_v43 = vunpack.i.l.bf16 %v4416_v53  ;;  %v3549_v52 = vld [vmem:[%s5273_s4 + $0x28] sm:$0xff] }
0x14cc   :  { %v4251_v44 = vpack.c.bf16 %v4418_v42, %v4417_v43 }
0x14cd   :  { %v4421_v46 = vpop.permute.xlu1 %4420 }
0x14ce   :  { %4252 = vmatprep.subr.bf16.mxu0 %v4251_v44  ;;  %v4423_v48 = vunpack.i.h.bf16 %v4421_v46  ;;  %v4422_v49 = vunpack.i.l.bf16 %v4421_v46 }
0x14cf   :  { %4254 = vmatpush3.bf16.msra.mxu0 %v4251_v44 }
0x14d0   :  { %v4494_v56 = vpop.eup %4493  ;;  %3998 = vmatprep.subr.mxu0 %v3548_v45  ;;  %v4255_v57 = vpack.c.bf16 %v4423_v48, %v4422_v49 }
0x14d1   :  { %v2012_v47 = vmul.f32 %v4494_v56, %v4490_v37  ;;  %v2185_v61 = vpop.permute.xlu1 %2184 }
0x14d3   :  { %3995 = vmatprep.mubr.msk.f32.mxu0 %vm461_vm13, %v2012_v47 }
0x14d4   :  { %v4496_v50 = vpop.eup %4495 }
0x14d5   :  { %v2013_v51 = vmul.f32 %v4496_v50, %v4492_v39  ;;  %v2187_v62 = vpop.permute.xlu1 %2186 }
0x14d7   :  { %3996 = vmatmul.mubr.msk.f32.vlgmr.msra.gmra.mrb[10].mxu0 %vm461_vm13, %v2013_v51 }
0x14d8   :  { %3999 = vmatpush3.msra.mxu0 %v3548_v45 }
0x14d9   :  { %4257 = vmatprep.subr.msk.bf16.mxu0 %vm4778_vm12, %v4255_v57 }
0x15aa   :  { %v3997_v58 = vpop.f32.mrb[10].mxu0 }
0x15ab   :  { %v2092_v59 = vpop.f32.mrb[11].mxu0 }
0x15ac   :  { %4000 = vmatprep.mubr.msk.f32.mxu0 %vm104_vm0, %v2092_v59 }
0x15ad   :  { %4001 = vmatmul.mubr.msk.f32.vlgmr.msra.gmra.mrb[12].mxu0 %vm104_vm0, %v3997_v58 }
0x15ae   :  { %4260 = vmatpush3.bf16.xpose.msk.msra.mxu0 %vm4778_vm12, %v4255_v57  ;;  %4007 = vmatprep.mubr.msk.f32.mxu0 %vm104_vm0, %v2185_v61 }
0x15af   :  { %4017 = vmatprep.subr.mxu0 %v3549_v52 }
0x15b5   :  { %4008 = vmatmul.mubr.msk.f32.vlgmr.msra.gmra.mrb[14].mxu0 %vm104_vm0, %v2187_v62 }
0x15b6   :  { %4018 = vmatpush3.msra.mxu0 %v3549_v52 }
0x1688   :  { %v4009_v63 = vpop.f32.mrb[14].mxu0 }
0x1689   :  { %v2276_v0 = vmul.f32 0.35355338, %v4009_v63  ;;  %v2266_v1 = vpop.f32.mrb[15].mxu0 }
0x168a   :  { %v2275_v2 = vmul.f32 0.35355338, %v2266_v1 }
0x168b   :  { %v2278_v3 = vsel %vm4713_vm8, %v2276_v0, -1e+30 }
0x168c   :  { %v2282_v4 = vsel %vm461_vm13, %v2278_v3, -inf  ;;  %v2277_v5 = vsel %vm4706_vm7, %v2275_v2, -1e+30 }
0x168d   :  { %2283 = vmax.xlane.f32.xlu0 %v2282_v4  ;;  %v2279_v6 = vsel %vm461_vm13, %v2277_v5, -inf }
0x168e   :  { %2280 = vmax.xlane.f32.xlu1 %v2279_v6 }
0x169f   :  { %2471 = vrot.lane.b32.xlu1 %v5012_v15, %s4565_s22 }
0x16a3   :  { %4425 = vrot.lane.b32.xlu0 %v5018_v16, %s4566_s2 }
0x171a   :  { %v2284_v54 = vpop.xlane.xlu0 %2283 }
0x171b   :  { %v2286_v7 = vsub.f32 %v2278_v3, %v2284_v54  ;;  %v2281_v55 = vpop.xlane.xlu1 %2280 }
0x171c   :  { %v2285_v8 = vsub.f32 %v2277_v5, %v2281_v55 }
0x171d   :  { %v2289_v9 = vmul.f32 1.442695, %v2286_v7 }
0x171e   :  { %v2287_v10 = vmul.f32 1.442695, %v2285_v8  ;;  %v4426_v12 = vpop.permute.xlu0 %4425 }
0x171f   :  { %4497 = vpow2.f32 %v2289_v9  ;;  %v4428_v17 = vunpack.i.h.bf16 %v4426_v12  ;;  %v4427_v18 = vunpack.i.l.bf16 %v4426_v12 }
0x1720   :  { %4499 = vpow2.f32 %v2287_v10 }
0x1721   :  { %v4261_v19 = vpack.c.bf16 %v4428_v17, %v4427_v18 }
0x1723   :  { %4262 = vmatprep.subr.bf16.mxu1 %v4261_v19 }
0x1724   :  { %4264 = vmatpush3.bf16.msra.mxu1 %v4261_v19 }
0x1729   :  { %v4498_v20 = vpop.eup %4497 }
0x172a   :  { %v2294_v21 = vsel %vm461_vm13, %v4498_v20, 0.0  ;;  %v4500_v22 = vpop.eup %4499 }
0x172b   :  { %2295 = vadd.xlane.f32.xlu0 %v2294_v21  ;;  %v2291_v23 = vsel %vm461_vm13, %v4500_v22, 0.0 }
0x172f   :  { %2292 = vadd.xlane.f32.xlu0 %v2291_v23 }
0x1745   :  { %4430 = vrot.lane.b32.xlu0 %v5018_v16, %s5311_s29 }
0x1749   :  { %2473 = vrot.lane.b32.xlu0 %v5010_v14, %s4565_s22 }
0x174d   :  { %4435 = vrot.lane.b32.xlu0 %v5018_v16, %s5312_s30 }
0x1751   :  { %2758 = vrot.lane.b32.xlu0 %v5012_v15, %s5313_s0 }
0x1755   :  { %2760 = vrot.lane.b32.xlu0 %v5010_v14, %s5313_s0  ;;  %v2472_v14 = vpop.permute.xlu1 %2471 }
0x17b8   :  { %v2296_v25 = vpop.xlane.xlu0 %2295 }
0x17b9   :  { %4501 = vrcp.f32 %v2296_v25 }
0x17bc   :  { %v2293_v26 = vpop.xlane.xlu0 %2292 }
0x17bd   :  { %4503 = vrcp.f32 %v2293_v26 }
0x17c0   :  { %v4431_v27 = vpop.permute.xlu0 %4430 }
0x17c1   :  { %v4433_v29 = vunpack.i.h.bf16 %v4431_v27  ;;  %v4432_v30 = vunpack.i.l.bf16 %v4431_v27 }
0x17c3   :  { %v4265_v31 = vpack.c.bf16 %v4433_v29, %v4432_v30  ;;  %v4502_v33 = vpop.eup %4501 }
0x17c4   :  { %v2474_v32 = vpop.permute.xlu0 %2473  ;;  %v2300_v15 = vmul.f32 %v4502_v33, %v4498_v20 }
0x17c5   :  { %4267 = vmatprep.subr.msk.bf16.mxu1 %vm4778_vm12, %v4265_v31 }
0x17c7   :  { %v4504_v34 = vpop.eup %4503 }
0x17c8   :  { %v4436_v35 = vpop.permute.xlu0 %4435  ;;  %v2299_v36 = vmul.f32 %v4504_v34, %v4500_v22 }
0x17c9   :  { %v4438_v37 = vunpack.i.h.bf16 %v4436_v35  ;;  %v4437_v38 = vunpack.i.l.bf16 %v4436_v35 }
0x17ca   :  { %4014 = vmatprep.mubr.msk.f32.mxu1 %vm461_vm13, %v2299_v36 }
0x17cb   :  { %v4275_v39 = vpack.c.bf16 %v4438_v37, %v4437_v38  ;;  %4015 = vmatmul.mubr.msk.f32.vlgmr.msra.gmra.mrb[20].mxu1 %vm461_vm13, %v2300_v15 }
0x17cc   :  { %4270 = vmatpush3.bf16.xpose.msk.msra.mxu1 %vm4778_vm12, %v4265_v31  ;;  %4026 = vmatprep.mubr.msk.f32.mxu1 %vm104_vm0, %v2472_v14  ;;  %v2759_v40 = vpop.permute.xlu0 %2758 }
0x17cd   :  { %4277 = vmatprep.subr.msk.bf16.mxu1 %vm4778_vm12, %v4275_v39 }
0x17d0   :  { %v2761_v41 = vpop.permute.xlu0 %2760 }
0x17d3   :  { %4027 = vmatmul.mubr.msk.f32.vlgmr.msra.gmra.mrb[22].mxu1 %vm104_vm0, %v2474_v32  ;;  %v3550_v32 = vld [vmem:[%s5273_s4 + $0x30] sm:$0xff] }
0x17d4   :  { %4280 = vmatpush3.bf16.xpose.msk.msra.mxu1 %vm4778_vm12, %v4275_v39  ;;  %4045 = vmatprep.mubr.msk.f32.mxu1 %vm104_vm0, %v2759_v40 }
0x17db   :  { %4046 = vmatmul.mubr.msk.f32.vlgmr.msra.gmra.mrb[24].mxu1 %vm104_vm0, %v2761_v41  ;;  %v3551_v41 = vld [vmem:[%s5273_s4 + $0x38] sm:$0xff] }
0x189e   :  { %v4016_v53 = vpop.f32.mrb[20].mxu1 }
0x189f   :  { %v2379_v42 = vpop.f32.mrb[21].mxu1 }
0x18a0   :  { %4019 = vmatprep.mubr.msk.f32.mxu0 %vm104_vm0, %v2379_v42 }
0x18a1   :  { %4020 = vmatmul.mubr.msk.f32.vlgmr.msra.gmra.mrb[12].mxu0 %vm104_vm0, %v4016_v53 }
0x18a6   :  { %v4028_v43 = vpop.f32.mrb[22].mxu1 }
0x18a7   :  { %v2563_v60 = vmul.f32 0.35355338, %v4028_v43  ;;  %v2553_v44 = vpop.f32.mrb[23].mxu1  ;;  %v3553_v43 = vld [vmem:[%s5274_s5 + $0x1] ss:$0 sm:$0xff] }
0x18a8   :  { %v2562_v45 = vmul.f32 0.35355338, %v2553_v44 }
0x18a9   :  { %v2565_v56 = vsel %vm4713_vm8, %v2563_v60, -1e+30 }
0x18aa   :  { %v2569_v46 = vsel %vm461_vm13, %v2565_v56, -inf  ;;  %v2564_v47 = vsel %vm4706_vm7, %v2562_v45, -1e+30 }
0x18ab   :  { %2570 = vmax.xlane.f32.xlu0 %v2569_v46  ;;  %v2566_v48 = vsel %vm461_vm13, %v2564_v47, -inf }
0x18ac   :  { %2567 = vmax.xlane.f32.xlu1 %v2566_v48 }
0x18ae   :  { %v4047_v49 = vpop.f32.mrb[24].mxu1 }
0x18af   :  { %v2840_v50 = vpop.f32.mrb[25].mxu1  ;;  %v2850_v3 = vmul.f32 0.35355338, %v4047_v49 }
0x18b0   :  { %v2849_v63 = vmul.f32 0.35355338, %v2840_v50 }
0x18b1   :  { %v2852_v54 = vsel %vm4713_vm8, %v2850_v3, -1e+30  ;;  %v3592_v3 = vld [vmem:[%s5277_s8 + $0x30] sm:$0xff] }
0x18b2   :  { %v2851_v5 = vsel %vm4706_vm7, %v2849_v63, -1e+30  ;;  %v2856_v7 = vsel %vm461_vm13, %v2852_v54, -inf }
0x18b3   :  { %v2853_v6 = vsel %vm461_vm13, %v2851_v5, -inf }
0x1938   :  { %v2571_v51 = vpop.xlane.xlu0 %2570 }
0x1939   :  { %v2573_v57 = vsub.f32 %v2565_v56, %v2571_v51  ;;  %v2568_v58 = vpop.xlane.xlu1 %2567 }
0x193a   :  { %v2572_v59 = vsub.f32 %v2564_v47, %v2568_v58 }
0x193b   :  { %v2576_v61 = vmul.f32 1.442695, %v2573_v57 }
0x193c   :  { %v2574_v62 = vmul.f32 1.442695, %v2572_v59 }
0x193d   :  { %4505 = vpow2.f32 %v2576_v61 }
0x193e   :  { %4507 = vpow2.f32 %v2574_v62 }
0x1947   :  { %v4506_v0 = vpop.eup %4505 }
0x1948   :  { %v4508_v1 = vpop.eup %4507  ;;  %v2581_v2 = vsel %vm461_vm13, %v4506_v0, 0.0 }
0x1949   :  { %2582 = vadd.xlane.f32.xlu1 %v2581_v2  ;;  %v2578_v4 = vsel %vm461_vm13, %v4508_v1, 0.0 }
0x194a   :  { %2579 = vadd.xlane.f32.xlu0 %v2578_v4  ;;  %v3593_v4 = vld [vmem:[%s5277_s8 + $0x38] sm:$0xff] }
0x194d   :  { %2854 = vmax.xlane.f32.xlu1 %v2853_v6  ;;  %v3598_v6 = vld [vmem:[%s5279_s10 + $0x80] sm:$0xff] }
0x1951   :  { %2857 = vmax.xlane.f32.xlu1 %v2856_v7  ;;  %v3600_v7 = vld [vmem:[%s5279_s10 + $0x90] sm:$0xff] }
0x1960   :  { %4440 = vrot.lane.b32.xlu0 %v5018_v16, %s5314_s13 }
0x19d6   :  { %v2583_v55 = vpop.xlane.xlu1 %2582 }
0x19d7   :  { %4509 = vrcp.f32 %v2583_v55  ;;  %v2580_v8 = vpop.xlane.xlu0 %2579 }
0x19d8   :  { %4511 = vrcp.f32 %v2580_v8  ;;  %v3601_v8 = vld [vmem:[%s5279_s10 + $0x98] sm:$0xff] }
0x19da   :  { %v2855_v9 = vpop.xlane.xlu1 %2854 }
0x19db   :  { %v4441_v24 = vpop.permute.xlu0 %4440  ;;  %v2859_v17 = vsub.f32 %v2851_v5, %v2855_v9  ;;  %v4289_v5 = vpack.c.bf16 %v3593_v4, %v3592_v3  ;;  %v4297_v9 = vpack.c.bf16 %v3601_v8, %v3600_v7 }
0x19dc   :  { %v4443_v10 = vunpack.i.h.bf16 %v4441_v24  ;;  %v4442_v12 = vunpack.i.l.bf16 %v4441_v24  ;;  %v3602_v24 = vld [vmem:[%s5279_s10 + $0xa0] sm:$0xff] }
0x19dd   :  { %v2861_v21 = vmul.f32 1.442695, %v2859_v17  ;;  %v3604_v17 = vld [vmem:[%s5279_s10 + $0xb0] sm:$0xff] }
0x19de   :  { %v4271_v18 = vpack.c.bf16 %v4443_v10, %v4442_v12  ;;  %v2858_v19 = vpop.xlane.xlu1 %2857  ;;  %v3603_v10 = vld [vmem:[%s5279_s10 + $0xa8] sm:$0xff] }
0x19df   :  { %v2860_v20 = vsub.f32 %v2852_v54, %v2858_v19  ;;  %v3599_v54 = vld [vmem:[%s5279_s10 + $0x88] sm:$0xff]  ;;  %v4301_v12 = vpack.c.bf16 %v3603_v10, %v3602_v24 }
0x19e0   :  { %4272 = vmatprep.subr.bf16.mxu0 %v4271_v18  ;;  %v4293_v55 = vpack.c.bf16 %v3599_v54, %v3598_v6 }
0x19e1   :  { %v4510_v28 = vpop.eup %4509  ;;  %v2863_v22 = vmul.f32 1.442695, %v2860_v20  ;;  %4274 = vmatpush3.bf16.msra.mxu0 %v4271_v18  ;;  %v3605_v18 = vld [vmem:[%s5279_s10 + $0xb8] sm:$0xff]  ;;  %v3606_v20 = vld [vmem:[%s5279_s10 + $0xc0] sm:$0xff] }
0x19e2   :  { %v4512_v23 = vpop.eup %4511  ;;  %v2587_v26 = vmul.f32 %v4510_v28, %v4506_v0  ;;  %4036 = vmatprep.subr.mxu0 %v3550_v32  ;;  %v3590_v0 = vld [vmem:[%s5277_s8 + $0x20] sm:$0xff]  ;;  %v4305_v19 = vpack.c.bf16 %v3605_v18, %v3604_v17  ;;  %v3607_v28 = vld [vmem:[%s5279_s10 + $0xc8] sm:$0xff] }
0x19e3   :  { %4513 = vpow2.f32 %v2863_v22  ;;  %v2586_v25 = vmul.f32 %v4512_v23, %v4508_v1  ;;  %v3591_v1 = vld [vmem:[%s5277_s8 + $0x28] sm:$0xff]  ;;  %v3608_v22 = vld [vmem:[%s5279_s10 + $0xd0] sm:$0xff]  ;;  %v3609_v23 = vld [vmem:[%s5279_s10 + $0xd8] sm:$0xff] }
0x19e4   :  { %4515 = vpow2.f32 %v2861_v21  ;;  %v4285_v2 = vpack.c.bf16 %v3591_v1, %v3590_v0  ;;  %v4309_v21 = vpack.c.bf16 %v3607_v28, %v3606_v20  ;;  %v3618_v17 = vld [vmem:[%s5281_s12 + $0x1] ss:$0 sm:$0xff] }
0x19e5   :  { %4033 = vmatprep.mubr.msk.f32.mxu0 %vm461_vm13, %v2586_v25  ;;  %v4313_v25 = vpack.c.bf16 %v3609_v23, %v3608_v22 }
0x19e6   :  { %4034 = vmatmul.mubr.msk.f32.vlgmr.msra.gmra.mrb[16].mxu0 %vm461_vm13, %v2587_v26  ;;  %4286 = vmatprep.subr.bf16.mxu1 %v4285_v2  ;;  %v3610_v26 = vld [vmem:[%s5279_s10 + $0xe0] sm:$0xff] }
0x19e7   :  { %4037 = vmatpush3.msra.mxu0 %v3550_v32  ;;  %4288 = vmatpush3.bf16.msra.mxu1 %v4285_v2 }
0x19e8   :  { %4290 = vmatprep.subr.bf16.mxu1 %v4289_v5 }
0x19eb   :  { %4292 = vmatpush3.bf16.msra.mxu1 %v4289_v5 }
0x19ed   :  { %v4514_v27 = vpop.eup %4513 }
0x19ee   :  { %v2868_v29 = vsel %vm461_vm13, %v4514_v27, 0.0  ;;  %v4516_v30 = vpop.eup %4515 }
0x19ef   :  { %2869 = vadd.xlane.f32.xlu1 %v2868_v29  ;;  %v2865_v31 = vsel %vm461_vm13, %v4516_v30, 0.0 }
0x19f3   :  { %2866 = vadd.xlane.f32.xlu1 %v2865_v31 }
0x1a04   :  { %4445 = vrot.lane.b32.xlu1 %v5018_v16, %s5315_s24 }
0x1a7c   :  { %v2870_v33 = vpop.xlane.xlu1 %2869 }
0x1a80   :  { %v2867_v34 = vpop.xlane.xlu1 %2866 }
0x1a81   :  { %4517 = vrcp.f32 %v2867_v34 }
0x1a82   :  { %4519 = vrcp.f32 %v2870_v33 }
0x1a84   :  { %v4446_v35 = vpop.permute.xlu1 %4445 }
0x1a85   :  { %v4448_v36 = vunpack.i.h.bf16 %v4446_v35  ;;  %v4447_v15 = vunpack.i.l.bf16 %v4446_v35 }
0x1a87   :  { %v4281_v37 = vpack.c.bf16 %v4448_v36, %v4447_v15  ;;  %v3588_v15 = vld [vmem:[%s5275_s6 + $0x1] ss:$0 sm:$0xff] }
0x1a89   :  { %4282 = vmatprep.subr.bf16.mxu0 %v4281_v37 }
0x1a8b   :  { %v4518_v38 = vpop.eup %4517 }
0x1a8c   :  { %v4520_v40 = vpop.eup %4519  ;;  %v2873_v16 = vmul.f32 %v4518_v38, %v4516_v30  ;;  %v3589_v38 = vld [vmem:[%s5276_s7 + $0x1] ss:$0 sm:$0xff] }
0x1a8d   :  { %v2874_v52 = vmul.f32 %v4520_v40, %v4514_v27  ;;  %v3611_v27 = vld [vmem:[%s5279_s10 + $0xe8] sm:$0xff] }
0x1a8e   :  { %v4317_v29 = vpack.c.bf16 %v3611_v27, %v3610_v26 }
0x1ab9   :  { %v4035_v14 = vpop.f32.mrb[16].mxu0 }
0x1aba   :  { %v2666_v39 = vpop.f32.mrb[17].mxu0 }
0x1abb   :  { %4038 = vmatprep.mubr.msk.f32.mxu0 %vm104_vm0, %v2666_v39 }
0x1abc   :  { %4039 = vmatmul.mubr.msk.f32.vlgmr.msra.gmra.mrb[12].mxu0 %vm104_vm0, %v4035_v14 }
0x1abd   :  { %4284 = vmatpush3.bf16.msra.mxu0 %v4281_v37  ;;  %4052 = vmatprep.mubr.msk.f32.mxu0 %vm461_vm13, %v2873_v16 }
0x1abe   :  { %4055 = vmatprep.subr.mxu0 %v3551_v41 }
0x1ac0   :  { %4053 = vmatmul.mubr.msk.f32.vlgmr.msra.gmra.mrb[18].mxu0 %vm461_vm13, %v2874_v52 }
0x1ac1   :  { %4056 = vmatpush3.msra.mxu0 %v3551_v41 }
0x1ac2   :  { %4294 = vmatprep.subr.bf16.mxu0 %v4293_v55 }
0x1b93   :  { %v4054_v53 = vpop.f32.mrb[18].mxu0 }
0x1b94   :  { %v2953_v42 = vpop.f32.mrb[19].mxu0 }
0x1b95   :  { %4057 = vmatprep.mubr.msk.f32.mxu0 %vm104_vm0, %v2953_v42  ;;  %v3613_v42 = vld [vmem:[%s5279_s10 + $0xf8] sm:$0xff] }
0x1b96   :  { %4058 = vmatmul.mubr.msk.f32.vlgmr.msra.gmra.mrb[12].mxu0 %vm104_vm0, %v4054_v53  ;;  %v3612_v53 = vld [vmem:[%s5279_s10 + $0xf0] sm:$0xff] }
0x1b97   :  { %4296 = vmatpush3.bf16.msra.mxu0 %v4293_v55 }
0x1b98   :  { %4298 = vmatprep.subr.bf16.mxu0 %v4297_v9 }
0x1b9b   :  { %4300 = vmatpush3.bf16.msra.mxu0 %v4297_v9 }
0x1b9c   :  { %4302 = vmatprep.subr.bf16.mxu0 %v4301_v12 }
0x1b9f   :  { %4304 = vmatpush3.bf16.msra.mxu0 %v4301_v12 }
0x1ba0   :  { %4306 = vmatprep.subr.bf16.mxu0 %v4305_v19 }
0x1ba3   :  { %4308 = vmatpush3.bf16.msra.mxu0 %v4305_v19  ;;  %v3619_v19 = vld [vmem:[%s5310_s3 + $0x1] ss:$0 sm:$0xff] }
0x1ba4   :  { %4310 = vmatprep.subr.bf16.mxu0 %v4309_v21 }
0x1ba7   :  { %4312 = vmatpush3.bf16.msra.mxu0 %v4309_v21 }
0x1ba8   :  { %4314 = vmatprep.subr.bf16.mxu0 %v4313_v25 }
0x1bab   :  { %4316 = vmatpush3.bf16.msra.mxu0 %v4313_v25 }
0x1bac   :  { %4318 = vmatprep.subr.bf16.mxu0 %v4317_v29 }
0x1baf   :  { %4320 = vmatpush3.bf16.msra.mxu0 %v4317_v29 }
0x1c69   :  { %v4059_v60 = vpop.f32.mrb[12].mxu0 }
0x1c6a   :  { %v4335_v44 = vadd.f32 %v4059_v60, %v3553_v43  ;;  %v3034_v45 = vpop.f32.mrb[13].mxu0  ;;  %v3595_v60 = vld [vmem:[%s5278_s9 + $0x1] ss:$0 sm:$0xff] }
0x1c6b   :  { %v4336_v56 = vadd.f32 %v3553_v43, %v3034_v45  ;;  %v4321_v43 = vpack.c.bf16 %v3613_v42, %v3612_v53 }
0x1c6c   :  { %v3046_v46 = vadd.f32 %v4335_v44, %v5006_v13 }
0x1c6d   :  { %v3045_v47 = vadd.f32 %v4336_v56, %v5002_v11  ;;  %4322 = vmatprep.subr.bf16.mxu0 %v4321_v43 }
0x1c6e   :  { %v3054_v48 = vsel %vm275_vm11, %v3046_v46, 0.0  ;;  %4324 = vmatpush3.bf16.msra.mxu0 %v4321_v43 }
0x1c6f   :  { %3055 = vadd.xlane.f32.xlu1 %v3054_v48  ;;  %v3051_v49 = vsel %vm275_vm11, %v3045_v47, 0.0 }
0x1c70   :  { %3052 = vadd.xlane.f32.xlu0 %v3051_v49  ;;  %v3615_v49 = vld [vmem:[%s5280_s11 + $0x1] ss:$0 sm:$0xff] }
0x1cfc   :  { %v3056_v50 = vpop.xlane.xlu1 %3055 }
0x1cfd   :  { %v3058_v51 = vmul.f32 0.03125, %v3056_v50  ;;  %v3053_v57 = vpop.xlane.xlu0 %3052 }
0x1cfe   :  { %v3057_v58 = vmul.f32 0.03125, %v3053_v57 }
0x1cff   :  { %v5139_v59 = vsub.f32 %v3046_v46, %v3058_v51 }
0x1d00   :  { %v3059_v61 = vsub.f32 %v3045_v47, %v3057_v58 }
0x1d01   :  { %v3062_v13 = vmul.f32 %v5139_v59, %v5139_v59 }
0x1d02   :  { %v3061_v62 = vmul.f32 %v3059_v61, %v3059_v61 }
0x1d03   :  { %v3066_v11 = vsel %vm275_vm11, %v3062_v13, 0.0 }
0x1d04   :  { %v3063_v63 = vsel %vm275_vm11, %v3061_v62, 0.0 }
0x1d05   :  { %3064 = vadd.xlane.f32.xlu0 %v3063_v63 }
0x1d09   :  { %3067 = vadd.xlane.f32.xlu0 %v3066_v11 }
0x1d92   :  { %v3065_v30 = vpop.xlane.xlu0 %3064 }
0x1d93   :  { %v3069_v31 = vmul.f32 0.03125, %v3065_v30 }
0x1d95   :  { %v3071_v32 = vadd.f32 1e-05, %v3069_v31 }
0x1d96   :  { %v3068_v33 = vpop.xlane.xlu0 %3067 }
0x1d97   :  { %4521 = vrsqrt.f32 %v3071_v32  ;;  %v3070_v34 = vmul.f32 0.03125, %v3068_v33 }
0x1d99   :  { %v3072_v35 = vadd.f32 1e-05, %v3070_v34 }
0x1d9b   :  { %4523 = vrsqrt.f32 %v3072_v35 }
0x1da1   :  { %v4522_v36 = vpop.eup %4521 }
0x1da2   :  { %v3075_v37 = vmul.f32 %v4522_v36, %v3059_v61 }
0x1da4   :  { %v3083_v14 = vmul.f32 %v3588_v15, %v3075_v37 }
0x1da5   :  { %v4524_v39 = vpop.eup %4523 }
0x1da6   :  { %v3076_v40 = vmul.f32 %v4524_v39, %v5139_v59  ;;  %v3091_v16 = vadd.f32 %v3589_v38, %v3083_v14  ;;  %v3382_v14 = vld [vmem:[%s5285_s16 + $0x8] sm:$0xff] }
0x1da8   :  { %v3084_v41 = vmul.f32 %v3588_v15, %v3076_v40  ;;  %4068 = vmatprep.mubr.msk.f32.mxu1 %vm275_vm11, %v3091_v16  ;;  %v3383_v40 = vld [vmem:[%s5285_s16 + $0x10] sm:$0xff] }
0x1daa   :  { %v3092_v52 = vadd.f32 %v3589_v38, %v3084_v41  ;;  %v3381_v38 = vld [vmem:[%s5285_s16] sm:$0xff] }
0x1dab   :  { %v4325_v39 = vpack.c.bf16 %v3382_v14, %v3381_v38 }
0x1dac   :  { %4069 = vmatmul.mubr.msk.f32.vlgmr.msra.gmra.mrb[26].mxu1 %vm275_vm11, %v3092_v52 }
0x1dad   :  { %4326 = vmatprep.subr.bf16.mxu1 %v4325_v39 }
0x1dae   :  { %4328 = vmatpush3.bf16.msra.mxu1 %v4325_v39 }
0x1e7f   :  { %v4070_v44 = vpop.f32.mrb[26].mxu1 }
0x1e80   :  { %v3184_v45 = vadd.f32 %v4070_v44, %v3595_v60  ;;  %v3178_v56 = vpop.f32.mrb[27].mxu1 }
0x1e81   :  { %v3179_v46 = vadd.f32 %v3595_v60, %v3178_v56  ;;  %v3620_v56 = vld [vmem:[%s5283_s14] ss:$0 sm:$0xff]  ;;  %s4571_s14 = smov [#allocation2]  }
0x1e82   :  { %v3188_v48 = vmax.f32 %v3184_v45, 0.0  ;;  %s3480_s5 = sshll.u32 %s4571_s14, 4  ;;  %s3481_s5 = int_to_ptr.vmem [resolvable:$true] %s3480_s5 }
0x1e83   :  { %v3187_v47 = vmax.f32 %v3179_v46, 0.0  ;;  %p4538_p1 = scmp.lt.s32.totalorder %s3481_s5, %s3481_s5 }
0x1e85   :  { %4103 = vmatprep.mubr.f32.mxu0 %v3187_v47  ;;  %v3621_v47 = vld [vmem:[%s5284_s15] ss:$0 sm:$0xff]  ;;  %s4533_s15 = scalar_lea.vmem %s3481_s5, 256 }
0x1e86   :  { %4104 = vmatmul.mubr.f32.vlgmr.msra.gmra.mrb[20].mxu0 %v3188_v48  ;;  %p4534_p0 = scmp.ne.s32.totalorder %s3481_s5, %s4533_s15  ;;  %p4539_p2 = scmp.lt.s32.totalorder %s4533_s15, %s4533_s15 }
0x1e88   :  { %p4540_p3 = por %p4539_p2, %p4538_p1 }
0x1e8a   :  { %p4541_p4 = pnand %p4540_p3, %p4534_p0 }
0x1f59   :  { %v4105_v50 = vpop.f32.mrb[20].mxu0 }
0x1f5a   :  { %v3280_v51 = vpop.f32.mrb[21].mxu0  ;;  %v3286_v57 = vadd.f32 %v4105_v50, %v3615_v49 }
0x1f5b   :  { %v3281_v58 = vadd.f32 %v3615_v49, %v3280_v51 }
0x1f5c   :  { %v3290_v62 = vadd.f32 %v3286_v57, %v3092_v52 }
0x1f5d   :  { %v3289_v59 = vadd.f32 %v3281_v58, %v3091_v16  ;;  %v3384_v16 = vld [vmem:[%s5285_s16 + $0x18] sm:$0xff] }
0x1f5e   :  { %v3298_v63 = vsel %vm275_vm11, %v3290_v62, 0.0  ;;  %v4329_v41 = vpack.c.bf16 %v3384_v16, %v3383_v40 }
0x1f5f   :  { %v3295_v61 = vsel %vm275_vm11, %v3289_v59, 0.0 }
0x1f60   :  { %3296 = vadd.xlane.f32.xlu0 %v3295_v61  ;;  %4330 = vmatprep.subr.bf16.mxu1 %v4329_v41 }
0x1f61   :  { %4332 = vmatpush3.bf16.msra.mxu1 %v4329_v41 }
0x1f64   :  { %3299 = vadd.xlane.f32.xlu0 %v3298_v63 }
0x1fed   :  { %v3297_v13 = vpop.xlane.xlu0 %3296 }
0x1fee   :  { %v3301_v11 = vmul.f32 0.03125, %v3297_v13 }
0x1ff0   :  { %v3303_v0 = vsub.f32 %v3289_v59, %v3301_v11  ;;  %v3622_v59 = vld [vmem:[%s5286_s17] ss:$0 sm:$0xff] }
0x1ff1   :  { %v3300_v1 = vpop.xlane.xlu0 %3299 }
0x1ff2   :  { %v3302_v2 = vmul.f32 0.03125, %v3300_v1  ;;  %v3305_v3 = vmul.f32 %v3303_v0, %v3303_v0 }
0x1ff4   :  { %v3304_v4 = vsub.f32 %v3290_v62, %v3302_v2  ;;  %v3307_v5 = vsel %vm275_vm11, %v3305_v3, 0.0 }
0x1ff5   :  { %3308 = vadd.xlane.f32.xlu0 %v3307_v5 }
0x1ff6   :  { %v3306_v6 = vmul.f32 %v3304_v4, %v3304_v4 }
0x1ff8   :  { %v3310_v54 = vsel %vm275_vm11, %v3306_v6, 0.0 }
0x1ff9   :  { %3311 = vadd.xlane.f32.xlu1 %v3310_v54 }
0x2082   :  { %v3309_v7 = vpop.xlane.xlu0 %3308 }
0x2083   :  { %v3313_v55 = vmul.f32 0.03125, %v3309_v7 }
0x2085   :  { %v3315_v8 = vadd.f32 1e-05, %v3313_v55 }
0x2086   :  { %v3312_v9 = vpop.xlane.xlu1 %3311 }
0x2087   :  { %4525 = vrsqrt.f32 %v3315_v8  ;;  %v3314_v24 = vmul.f32 0.03125, %v3312_v9 }
0x2089   :  { %v3316_v10 = vadd.f32 1e-05, %v3314_v24 }
0x208b   :  { %4527 = vrsqrt.f32 %v3316_v10 }
0x2091   :  { %v4526_v12 = vpop.eup %4525 }
0x2092   :  { %v3319_v18 = vmul.f32 %v4526_v12, %v3303_v0 }
0x2094   :  { %v3327_v20 = vmul.f32 %v3618_v17, %v3319_v18 }
0x2095   :  { %v4528_v28 = vpop.eup %4527 }
0x2096   :  { %v3335_v21 = vadd.f32 %v3619_v19, %v3327_v20  ;;  %v3320_v22 = vmul.f32 %v4528_v28, %v3304_v4 }
0x2098   :  { %v3339_v23 = vsel %vm275_vm11, %v3335_v21, 0.0  ;;  %v3328_v25 = vmul.f32 %v3618_v17, %v3320_v22 }
0x2099   :  { %3340 = vadd.xlane.f32.xlu0 %v3339_v23 }
0x209a   :  { %v3336_v26 = vadd.f32 %v3619_v19, %v3328_v25 }
0x209c   :  { %v3342_v27 = vsel %vm275_vm11, %v3336_v26, 0.0 }
0x209d   :  { %3343 = vadd.xlane.f32.xlu1 %v3342_v27 }
0x2126   :  { %v3341_v29 = vpop.xlane.xlu0 %3340 }
0x2127   :  { %v3345_v30 = vmul.f32 0.03125, %v3341_v29 }
0x2129   :  { %v3347_v31 = vsub.f32 %v3335_v21, %v3345_v30 }
0x212a   :  { %v3344_v32 = vpop.xlane.xlu1 %3343 }
0x212b   :  { %v3346_v33 = vmul.f32 0.03125, %v3344_v32  ;;  %v3349_v34 = vmul.f32 %v3347_v31, %v3347_v31 }
0x212d   :  { %v3348_v35 = vsub.f32 %v3336_v26, %v3346_v33  ;;  %v3351_v36 = vsel %vm275_vm11, %v3349_v34, 0.0 }
0x212e   :  { %3352 = vadd.xlane.f32.xlu0 %v3351_v36 }
0x212f   :  { %v3350_v15 = vmul.f32 %v3348_v35, %v3348_v35 }
0x2131   :  { %v3354_v37 = vsel %vm275_vm11, %v3350_v15, 0.0 }
0x2132   :  { %3355 = vadd.xlane.f32.xlu1 %v3354_v37 }
0x21bb   :  { %v3353_v52 = vpop.xlane.xlu0 %3352 }
0x21bc   :  { %v3357_v53 = vmul.f32 0.03125, %v3353_v52 }
0x21be   :  { %v3359_v42 = vadd.f32 1e-05, %v3357_v53 }
0x21bf   :  { %v3356_v43 = vpop.xlane.xlu1 %3355 }
0x21c0   :  { %4529 = vrsqrt.f32 %v3359_v42  ;;  %v3358_v60 = vmul.f32 0.03125, %v3356_v43 }
0x21c2   :  { %v3360_v44 = vadd.f32 1e-05, %v3358_v60 }
0x21c4   :  { %4531 = vrsqrt.f32 %v3360_v44 }
0x21ca   :  { %v4530_v45 = vpop.eup %4529 }
0x21cb   :  { %v3363_v46 = vmul.f32 %v4530_v45, %v3347_v31 }
0x21cd   :  { %v3371_v48 = vmul.f32 %v3620_v56, %v3363_v46 }
0x21ce   :  { %v4532_v49 = vpop.eup %4531 }
0x21cf   :  { %v3364_v50 = vmul.f32 %v4532_v49, %v3348_v35  ;;  %v3379_v51 = vadd.f32 %v3621_v47, %v3371_v48 }
0x21d1   :  { %v3372_v57 = vmul.f32 %v3620_v56, %v3364_v50  ;;  %4114 = vmatprep.mubr.msk.f32.mxu1 %vm275_vm11, %v3379_v51 }
0x21d3   :  { %v3380_v58 = vadd.f32 %v3621_v47, %v3372_v57 }
0x21d5   :  { %4115 = vmatmul.mubr.msk.f32.vlgmr.msra.gmra.mrb[28].mxu1 %vm275_vm11, %v3380_v58 }
0x22a8   :  { %v4116_v61 = vpop.f32.mrb[28].mxu1 }
0x22a9   :  { %v3470_v62 = vadd.f32 %v4116_v61, %v3622_v59  ;;  %v3464_v63 = vpop.f32.mrb[29].mxu1 }
0x22aa   :  { %v3465_v13 = vadd.f32 %v3622_v59, %v3464_v63 }
0x22ab   :  { %3474 = vst [vmem:[#allocation2 + $0x8] sm:$0xff] %v3470_v62 }
0x22ac   :  { %3473 = vst [vmem:[#allocation2] sm:$0xff] %v3465_v13 }
0x22ad   :  { %4544 = shalt.err (!%p4541_p4)
}
0x22ae   :  { %s4545_s17 = scalar_lea.hbm %s5287_s18, 256 }
0x22af   :  { %p4546_p5 = scmp.ne.s32.totalorder %s5287_s18, %s4545_s17  ;;  %p4549_p6 = scmp.lt.u32.totalorder %s4545_s17, %s5287_s18 }
0x22b1   :  { %p4551_p7 = pnand %p4549_p6, %p4546_p5 }
0x22b3   :  { %4554 = shalt.err (!%p4551_p7)
}
0x22b4   :  { %s4572_s30 = smov 128   ;;  %s4573_s0 = smov 8  }
0x22b5   :  { %3486 = dma.vmem_to_hbm [thread:$0]  %s3481_s5, 256, %s5287_s18, [#allocation3], %s4572_s30, %s4572_s30, %s4573_s0  }
0x22b6   :  { %4555 = dma.done.wait [#allocation3], 256  }
0x22b7   :  { %4556 = vsyncadd [#allocation3], 4294967040 }
0x22b8   :  { %3490 = vsyncpa [#allocation3], 1 }

</bundles_post_ra>
